<compile_context>
chip_gen: v6e
topology: v6e:2x2x1
jax: 0.10.0
libtpu: 0.0.40
codegen_flags: <defaults>
</compile_context>

<pallas_src>
import functools

import jax
import jax.numpy as jnp
from jax.experimental import pallas as pl
from jax.experimental.pallas import tpu as pltpu

LANE = 128


def _round_up(x, m):
    return ((x + m - 1) // m) * m


def _vmem_limit_bytes():
    """~3/4 of physical VMEM (per TensorCore): ~96 MiB on v5e/v6e, ~48 MiB on v7x."""
    try:
        cap = int(pltpu.get_tpu_info().vmem_capacity_bytes)
    except Exception:
        cap = 64 * 1024 * 1024          # conservative fallback, safe on every part
    cap = min(max(cap, 32 * 1024 * 1024), 128 * 1024 * 1024)
    return (cap // 4) * 3


# -----------------------------------------------------------------------------
# Fused kernel: per grid step = one time block of tt masked GRU steps plus the
# batched Linear(H, V) + LogSoftmax for that block.
# grid = (batch blocks [parallel], time blocks [arbitrary, sequential carry]).
# -----------------------------------------------------------------------------
def decoder_kernel(len_ref, x_ref, h0_ref, wih_ref, whh_ref, bih_ref, bhh_ref,
                   wout_ref, bout_ref, out_ref, hT_ref, gi_ref, o_ref,
                   *, bb, tt, hp, v_pad):
    t_blk = pl.program_id(1)

    # hT's block index is constant along the time axis -> it stays resident in
    # VMEM across time blocks and doubles as the hidden-state carry.
    @pl.when(t_blk == 0)
    def _():
        hT_ref[...] = h0_ref[...]

    lengths = len_ref[...]                              # (bb, 1) int32
    t_base = t_blk * tt
    e = x_ref.shape[-1]

    # ---- Stage 1: input-gate projections for the WHOLE time block ----------
    # Independent of h, so they come off the sequential critical path: one
    # (tt*bb, E) x (E, 3Hp) MXU matmul instead of 3*tt tiny per-step dots.
    x_all = x_ref[...].reshape(tt * bb, e)              # layout-preserving (bb % 8 == 0)
    gi_ref[...] = jnp.dot(x_all, wih_ref[...],
                          preferred_element_type=jnp.float32) + bih_ref[...]

    # ---- Stage 2: sequential masked GRU recurrence --------------------------
    w_hh = whh_ref[...]                                 # (Hp, 3Hp) bf16, fused gates
    b_hh = bhh_ref[...]                                 # (1, 3Hp) f32
    h = hT_ref[...]                                     # (bb, Hp) f32 carry
    # Short static trip count -> fully unrolled; all slice offsets are static.
    for lt in range(tt):
        rows = slice(lt * bb, (lt + 1) * bb)            # sublane-aligned (bb % 8 == 0)
        gh = jnp.dot(h.astype(jnp.bfloat16), w_hh,
                     preferred_element_type=jnp.float32) + b_hh
        # Hp is a multiple of 128 -> gate slices are lane-tile aligned.
        r = jax.nn.sigmoid(gi_ref[rows, 0:hp] + gh[:, 0:hp])
        z = jax.nn.sigmoid(gi_ref[rows, hp:2 * hp] + gh[:, hp:2 * hp])
        n = jnp.tanh(gi_ref[rows, 2 * hp:3 * hp] + r * gh[:, 2 * hp:3 * hp])
        h_new = (1.0 - z) * n + z * h
        valid = lengths > (t_base + lt)                 # (bb, 1) bool
        h = jnp.where(valid, h_new, h)                  # carry frozen past length[b]
        o_ref[rows, :] = jnp.where(valid, h_new, 0.0)   # padded steps feed zero rows
    hT_ref[...] = h

    # ---- Stage 3: output projection + log_softmax for the WHOLE block ------
    # One (tt*bb, Hp) x (Hp, Vp) matmul, one batched log_softmax, tt lane-dense
    # 128-aligned stores (row slices at bb multiples are clean sublane slices).
    # TODO(synk): for very large vocab on v7x, tile the V axis and use a
    # streaming running-max/running-sum (flash-softmax) finalize pass instead
    # of keeping W_out and the full logits block resident.
    logits = jnp.dot(o_ref[...].astype(jnp.bfloat16), wout_ref[...],
                     preferred_element_type=jnp.float32) + bout_ref[...]
    m = jnp.max(logits, axis=-1, keepdims=True)
    s = logits - m
    # (v6e/v7x could run the exp in bf16 on the EUP; kept f32 for v5e parity.)
    lse = jnp.log(jnp.sum(jnp.exp(s), axis=-1, keepdims=True))
    lp = (s - lse).astype(out_ref.dtype)                # (tt*bb, Vp)
    for lt in range(tt):
        out_ref[:, lt * v_pad:(lt + 1) * v_pad] = lp[lt * bb:(lt + 1) * bb, :]


# -----------------------------------------------------------------------------
# Parameter packing: PyTorch nn.GRU / nn.Linear layout -> kernel layout.
# Hidden size padded to Hp = round_up(H, 128); padded rows/cols are zero, which
# keeps the padded hidden lanes exactly 0 through the recurrence and leaves the
# real-column results bit-identical.
# -----------------------------------------------------------------------------
def pack_params(tp):
    three_h, E = tp["w_ih"].shape
    H = three_h // 3
    V = tp["w_out"].shape[0]
    Hp = _round_up(H, LANE)
    Vp = _round_up(V, LANE)

    # PyTorch gate order [r, z, n]; transpose to (in_dim, H) per gate.
    wih_g = jnp.transpose(tp["w_ih"].reshape(3, H, E), (0, 2, 1))   # (3, E, H)
    whh_g = jnp.transpose(tp["w_hh"].reshape(3, H, H), (0, 2, 1))   # (3, H, H)
    bih_g = tp["b_ih"].reshape(3, H)
    bhh_g = tp["b_hh"].reshape(3, H)

    wih = jnp.zeros((E, 3 * Hp), jnp.float32)
    whh = jnp.zeros((Hp, 3 * Hp), jnp.float32)
    bih = jnp.zeros((1, 3 * Hp), jnp.float32)
    bhh = jnp.zeros((1, 3 * Hp), jnp.float32)
    for g in range(3):
        wih = wih.at[:, g * Hp:g * Hp + H].set(wih_g[g])
        whh = whh.at[:H, g * Hp:g * Hp + H].set(whh_g[g])
        bih = bih.at[0, g * Hp:g * Hp + H].set(bih_g[g])
        bhh = bhh.at[0, g * Hp:g * Hp + H].set(bhh_g[g])

    # Pad vocab to x128 lanes: padded columns get weight 0 and bias -1e30 so exp
    # underflows to exactly 0 and the real-column log-softmax is unchanged.
    wout = jnp.zeros((Hp, Vp), jnp.float32).at[:H, :V].set(tp["w_out"].T)
    bout = jnp.full((1, Vp), -1e30, jnp.float32).at[0, :V].set(tp["b_out"])

    return {
        "embedding": tp["embedding"].astype(jnp.bfloat16),
        "wih": wih.astype(jnp.bfloat16), "whh": whh.astype(jnp.bfloat16),
        "bih": bih, "bhh": bhh,
        "wout": wout.astype(jnp.bfloat16), "bout": bout,
    }


# -----------------------------------------------------------------------------
# Wrapper: RNNDecoder.forward((inputs, lengths), state) equivalent.
# -----------------------------------------------------------------------------
@functools.partial(jax.jit, static_argnames=("vocab_size", "bb", "tt", "out_dtype"))
def rnn_decoder_forward(tokens, lengths, hidden, kp, *, vocab_size, bb=128, tt=8,
                        out_dtype=jnp.float32):
    """tokens: (B, T) int32; lengths: (B,) int32; hidden: (1, B, H) f32.

    bb: batch block (multiple of 8; 128 on v5e, 256 on v6e/v7x fills the MXU).
    tt: time-block length; size it so 2*bb*tt*Vp*4 (output) + scratches + the
        resident weights fit the per-generation VMEM budget (64 MiB/TC on v7x).
    """
    B, T = tokens.shape
    H = hidden.shape[-1]
    E = kp["embedding"].shape[-1]
    Hp, Vp = kp["wout"].shape

    Bp = _round_up(B, bb)
    Tp = _round_up(T, tt)

    # Pad batch/time; padded rows get length 0 -> recurrence frozen, sliced away.
    tok_p = jnp.zeros((Bp, Tp), jnp.int32).at[:B, :T].set(tokens)
    len_p = jnp.zeros((Bp, 1), jnp.int32).at[:B, 0].set(lengths.astype(jnp.int32))
    h0_p = jnp.zeros((Bp, Hp), jnp.float32).at[:B, :H].set(hidden[0].astype(jnp.float32))

    # TODO(synk): embedding gather stays in XLA; an in-kernel gather from a
    # VMEM-resident table (or per-row DMA gather for huge vocabs) would remove
    # this HBM round trip, but Mosaic gather support is shape-restricted.
    x_tbe = jnp.take(kp["embedding"], tok_p.T, axis=0)            # (Tp, Bp, E) bf16

    grid = (Bp // bb, Tp // tt)
    kernel = functools.partial(decoder_kernel, bb=bb, tt=tt, hp=Hp, v_pad=Vp)

    out2d, h_final = pl.pallas_call(
        kernel,
        out_shape=(jax.ShapeDtypeStruct((Bp, Tp * Vp), out_dtype),
                   jax.ShapeDtypeStruct((Bp, Hp), jnp.float32)),
        grid_spec=pltpu.PrefetchScalarGridSpec(
            num_scalar_prefetch=0,
            grid=grid,
            in_specs=[
                pl.BlockSpec((bb, 1), lambda b, t: (b, 0)),         # lengths
                pl.BlockSpec((tt, bb, E), lambda b, t: (t, b, 0)),  # x, time-major bf16
                pl.BlockSpec((bb, Hp), lambda b, t: (b, 0)),        # h0
                pl.BlockSpec((E, 3 * Hp), lambda b, t: (0, 0)),     # W_ih fused (bf16)
                pl.BlockSpec((Hp, 3 * Hp), lambda b, t: (0, 0)),    # W_hh fused (bf16)
                pl.BlockSpec((1, 3 * Hp), lambda b, t: (0, 0)),     # b_ih
                pl.BlockSpec((1, 3 * Hp), lambda b, t: (0, 0)),     # b_hh
                pl.BlockSpec((Hp, Vp), lambda b, t: (0, 0)),        # W_out (bf16, resident)
                pl.BlockSpec((1, Vp), lambda b, t: (0, 0)),         # b_out
            ],
            out_specs=[
                pl.BlockSpec((bb, tt * Vp), lambda b, t: (b, t)),   # lane-dense log-prob slab
                pl.BlockSpec((bb, Hp), lambda b, t: (b, 0)),        # final hidden (carry)
            ],
            scratch_shapes=[
                pltpu.VMEM((tt * bb, 3 * Hp), jnp.float32),         # batched input gates
                pltpu.VMEM((tt * bb, Hp), jnp.float32),             # masked rnn outputs
            ],
        ),
        compiler_params=pltpu.CompilerParams(
            # Batch blocks are independent -> "parallel" (v7x: both TensorCores
            # once B > bb); time carries the hidden state -> "arbitrary".
            dimension_semantics=("parallel", "arbitrary"),
            vmem_limit_bytes=_vmem_limit_bytes(),
        ),
    )(len_p, x_tbe, h0_p, kp["wih"], kp["whh"], kp["bih"], kp["bhh"],
      kp["wout"], kp["bout"])

    log_probs = out2d.reshape(Bp, Tp, Vp)[:B, :T, :vocab_size]     # free reshape + slice
    new_hidden = h_final[:B, :H][None]                             # (1, B, H)
    return log_probs, new_hidden


# -----------------------------------------------------------------------------
# Pure-JAX reference using the SAME numeric recipe (bf16 MXU operands, f32
# accumulation / elementwise), consuming the PyTorch-layout parameters.
# -----------------------------------------------------------------------------
def ref_forward(tokens, lengths, hidden, tp):
    B, T = tokens.shape
    H = hidden.shape[-1]
    wih_t = tp["w_ih"].T.astype(jnp.bfloat16)
    whh_t = tp["w_hh"].T.astype(jnp.bfloat16)
    wout_t = tp["w_out"].T.astype(jnp.bfloat16)
    bih, bhh, bout = tp["b_ih"], tp["b_hh"], tp["b_out"]
    x = jnp.take(tp["embedding"], tokens, axis=0).astype(jnp.bfloat16)   # (B, T, E)
    mask = jnp.arange(T)[None, :] < lengths[:, None]

    def step(h, inp):
        xt, mt = inp
        gi = jnp.dot(xt, wih_t, preferred_element_type=jnp.float32) + bih
        gh = jnp.dot(h.astype(jnp.bfloat16), whh_t, preferred_element_type=jnp.float32) + bhh
        r = jax.nn.sigmoid(gi[:, :H] + gh[:, :H])
        z = jax.nn.sigmoid(gi[:, H:2 * H] + gh[:, H:2 * H])
        n = jnp.tanh(gi[:, 2 * H:] + r * gh[:, 2 * H:])
        hn = (1.0 - z) * n + z * h
        m = mt[:, None]
        return jnp.where(m, hn, h), jnp.where(m, hn, 0.0)

    hT, outs = jax.lax.scan(step, hidden[0].astype(jnp.float32),
                            (jnp.transpose(x, (1, 0, 2)), mask.T))
    out_inputs = jnp.transpose(outs, (1, 0, 2))                          # (B, T, H)
    logits = jnp.dot(out_inputs.astype(jnp.bfloat16), wout_t,
                     preferred_element_type=jnp.float32) + bout
    return jax.nn.log_softmax(logits, axis=-1), hT[None]


if __name__ == "__main__":
    # Small config: vocab/output_size=24, input(embed)=16, hidden=32, B=2, T=8.
    V, E, H, B, T = 24, 16, 32, 2, 8

    key = jax.random.PRNGKey(0)
    keys = jax.random.split(key, 9)
    k = 1.0 / (H ** 0.5)

    # PyTorch-layout parameters (nn.GRU gate order [r, z, n]; nn.Linear (V, H)).
    torch_params = {
        "embedding": 0.1 * jax.random.normal(keys[0], (V, E), jnp.float32),
        "w_ih": jax.random.uniform(keys[1], (3 * H, E), jnp.float32, -k, k),
        "w_hh": jax.random.uniform(keys[2], (3 * H, H), jnp.float32, -k, k),
        "b_ih": jax.random.uniform(keys[3], (3 * H,), jnp.float32, -k, k),
        "b_hh": jax.random.uniform(keys[4], (3 * H,), jnp.float32, -k, k),
        "w_out": jax.random.uniform(keys[5], (V, H), jnp.float32, -k, k),
        "b_out": jax.random.uniform(keys[6], (V,), jnp.float32, -k, k),
    }
    tokens = jax.random.randint(keys[7], (B, T), 0, V, dtype=jnp.int32)
    lengths = jnp.array([T, 5], dtype=jnp.int32)
    hidden0 = 0.1 * jax.random.normal(keys[8], (1, B, H), jnp.float32)

    kp = pack_params(torch_params)
    ref_lp, ref_h = ref_forward(tokens, lengths, hidden0, torch_params)

    # (8, 8): whole sequence in one kernel step; (8, 4): exercises the resident
    # hidden-state carry across time blocks; (128, 8): MXU-filling batch block.
    for bb, tt in ((8, 8), (8, 4), (128, 8)):
        log_probs, new_hidden = rnn_decoder_forward(
            tokens, lengths, hidden0, kp, vocab_size=V, bb=bb, tt=tt)
        jax.block_until_ready((log_probs, new_hidden))
        assert log_probs.shape == (B, T, V) and new_hidden.shape == (1, B, H)
        err_lp = float(jnp.max(jnp.abs(log_probs - ref_lp)))
        err_h = float(jnp.max(jnp.abs(new_hidden - ref_h)))
        assert err_lp < 2e-3, (bb, tt, err_lp)
        assert err_h < 2e-3, (bb, tt, err_h)

    print("KERNEL_OK")
</pallas_src>

<mosaic_0001>
module attributes {stable_mosaic.version = 11 : i64} {
  func.func @decoder_kernel(%arg0: i32, %arg1: i32, %arg2: memref<8x1xi32, #tpu.memory_space<vmem>>, %arg3: memref<8x8x16xbf16, #tpu.memory_space<vmem>>, %arg4: memref<8x128xf32, #tpu.memory_space<vmem>>, %arg5: memref<16x384xbf16, #tpu.memory_space<vmem>>, %arg6: memref<128x384xbf16, #tpu.memory_space<vmem>>, %arg7: memref<1x384xf32, #tpu.memory_space<vmem>>, %arg8: memref<1x384xf32, #tpu.memory_space<vmem>>, %arg9: memref<128x128xbf16, #tpu.memory_space<vmem>>, %arg10: memref<1x128xf32, #tpu.memory_space<vmem>>, %arg11: memref<8x1024xf32, #tpu.memory_space<vmem>>, %arg12: memref<8x128xf32, #tpu.memory_space<vmem>>, %arg13: memref<64x384xf32, #tpu.memory_space<vmem>>, %arg14: memref<64x128xf32, #tpu.memory_space<vmem>>) attributes {dimension_semantics = [#tpu.dimension_semantics<parallel>, #tpu.dimension_semantics<arbitrary>], iteration_bounds = array<i64: 1, 1>, scalar_prefetch = 0 : i64, scratch_operands = 2 : i64, tpu.core_type = #tpu.core_type<tc>, window_params = [{transform_indices = @transform_0, window_bounds = array<i64: 8, 1>}, {transform_indices = @transform_1, window_bounds = array<i64: 8, 8, 16>}, {transform_indices = @transform_2, window_bounds = array<i64: 8, 128>}, {pipeline_mode = #tpu.pipeline_mode<synchronous>, transform_indices = @transform_3, window_bounds = array<i64: 16, 384>}, {pipeline_mode = #tpu.pipeline_mode<synchronous>, transform_indices = @transform_4, window_bounds = array<i64: 128, 384>}, {pipeline_mode = #tpu.pipeline_mode<synchronous>, transform_indices = @transform_5, window_bounds = array<i64: 1, 384>}, {pipeline_mode = #tpu.pipeline_mode<synchronous>, transform_indices = @transform_6, window_bounds = array<i64: 1, 384>}, {pipeline_mode = #tpu.pipeline_mode<synchronous>, transform_indices = @transform_7, window_bounds = array<i64: 128, 128>}, {pipeline_mode = #tpu.pipeline_mode<synchronous>, transform_indices = @transform_8, window_bounds = array<i64: 1, 128>}, {transform_indices = @transform_9, window_bounds = array<i64: 8, 1024>}, {transform_indices = @transform_10, window_bounds = array<i64: 8, 128>}]} {
    %c0_i32 = arith.constant 0 : i32
    %0 = arith.cmpi eq, %arg1, %c0_i32 : i32
    %1 = arith.extui %0 : i1 to i32
    %c0_i32_0 = arith.constant 0 : i32
    %2 = arith.cmpi ne, %1, %c0_i32_0 : i32
    scf.if %2 {
      %c0_135 = arith.constant 0 : index
      %c0_136 = arith.constant 0 : index
      %378 = vector.load %arg4[%c0_135, %c0_136] : memref<8x128xf32, #tpu.memory_space<vmem>>, vector<8x128xf32>
      %c0_137 = arith.constant 0 : index
      %c0_138 = arith.constant 0 : index
      %379 = vector.load %arg12[%c0_137, %c0_138] : memref<8x128xf32, #tpu.memory_space<vmem>>, vector<8x128xf32>
      tpu.vector_store %arg12[%c0_137, %c0_138], %378 {strides = array<i32>} : memref<8x128xf32, #tpu.memory_space<vmem>>, vector<8x128xf32>,
    } else {
    }
    %c0 = arith.constant 0 : index
    %c0_1 = arith.constant 0 : index
    %3 = vector.load %arg2[%c0, %c0_1] : memref<8x1xi32, #tpu.memory_space<vmem>>, vector<8x1xi32>
    %c8_i32 = arith.constant 8 : i32
    %4 = arith.muli %arg1, %c8_i32 : i32
    %c0_2 = arith.constant 0 : index
    %c0_3 = arith.constant 0 : index
    %c0_4 = arith.constant 0 : index
    %5 = vector.load %arg3[%c0_2, %c0_3, %c0_4] : memref<8x8x16xbf16, #tpu.memory_space<vmem>>, vector<8x8x16xbf16>
    %6 = vector.shape_cast %5 : vector<8x8x16xbf16> to vector<64x16xbf16>
    %c0_5 = arith.constant 0 : index
    %c0_6 = arith.constant 0 : index
    %7 = vector.load %arg5[%c0_5, %c0_6] : memref<16x384xbf16, #tpu.memory_space<vmem>>, vector<16x384xbf16>
    %cst = arith.constant dense<0.000000e+00> : vector<64x384xf32>
    %8 = tpu.matmul %6, %7, %cst {dimension_numbers = #tpu.dot_dimension_numbers<[1], [0], [0], [1], [0, 0, 1, 1], [], []>} : vector<64x16xbf16>, vector<16x384xbf16>, vector<64x384xf32> -> vector<64x384xf32>
    %c0_7 = arith.constant 0 : index
    %c0_8 = arith.constant 0 : index
    %9 = vector.load %arg7[%c0_7, %c0_8] : memref<1x384xf32, #tpu.memory_space<vmem>>, vector<1x384xf32>
    %10 = vector.broadcast %9 : vector<1x384xf32> to vector<64x384xf32>
    %11 = arith.addf %8, %10 : vector<64x384xf32>
    %c0_9 = arith.constant 0 : index
    %c0_10 = arith.constant 0 : index
    %12 = vector.load %arg13[%c0_9, %c0_10] : memref<64x384xf32, #tpu.memory_space<vmem>>, vector<64x384xf32>
    tpu.vector_store %arg13[%c0_9, %c0_10], %11 {strides = array<i32>} : memref<64x384xf32, #tpu.memory_space<vmem>>, vector<64x384xf32>,
    %c0_11 = arith.constant 0 : index
    %c0_12 = arith.constant 0 : index
    %13 = vector.load %arg6[%c0_11, %c0_12] : memref<128x384xbf16, #tpu.memory_space<vmem>>, vector<128x384xbf16>
    %c0_13 = arith.constant 0 : index
    %c0_14 = arith.constant 0 : index
    %14 = vector.load %arg8[%c0_13, %c0_14] : memref<1x384xf32, #tpu.memory_space<vmem>>, vector<1x384xf32>
    %c0_15 = arith.constant 0 : index
    %c0_16 = arith.constant 0 : index
    %15 = vector.load %arg12[%c0_15, %c0_16] : memref<8x128xf32, #tpu.memory_space<vmem>>, vector<8x128xf32>
    %16 = arith.truncf %15 : vector<8x128xf32> to vector<8x128xbf16>
    %cst_17 = arith.constant dense<0.000000e+00> : vector<8x384xf32>
    %17 = tpu.matmul %16, %13, %cst_17 {dimension_numbers = #tpu.dot_dimension_numbers<[1], [0], [0], [1], [0, 0, 1, 1], [], []>} : vector<8x128xbf16>, vector<128x384xbf16>, vector<8x384xf32> -> vector<8x384xf32>
    %18 = vector.broadcast %14 : vector<1x384xf32> to vector<8x384xf32>
    %19 = arith.addf %17, %18 : vector<8x384xf32>
    %c0_18 = arith.constant 0 : index
    %c0_19 = arith.constant 0 : index
    %20 = vector.load %arg13[%c0_18, %c0_19] : memref<64x384xf32, #tpu.memory_space<vmem>>, vector<8x128xf32>
    %21 = vector.extract_strided_slice %19 {offsets = [0, 0], sizes = [8, 128], strides = [1, 1]} : vector<8x384xf32> to vector<8x128xf32>
    %22 = arith.addf %20, %21 : vector<8x128xf32>
    %23 = arith.negf %22 : vector<8x128xf32>
    %24 = math.exp %23 : vector<8x128xf32>
    %cst_20 = arith.constant 1.000000e+00 : f32
    %25 = vector.broadcast %cst_20 : f32 to vector<8x128xf32>
    %26 = arith.addf %25, %24 : vector<8x128xf32>
    %27 = arith.divf %25, %26 : vector<8x128xf32>
    %c0_21 = arith.constant 0 : index
    %c128 = arith.constant 128 : index
    %28 = vector.load %arg13[%c0_21, %c128] : memref<64x384xf32, #tpu.memory_space<vmem>>, vector<8x128xf32>
    %29 = vector.extract_strided_slice %19 {offsets = [0, 128], sizes = [8, 128], strides = [1, 1]} : vector<8x384xf32> to vector<8x128xf32>
    %30 = arith.addf %28, %29 : vector<8x128xf32>
    %31 = arith.negf %30 : vector<8x128xf32>
    %32 = math.exp %31 : vector<8x128xf32>
    %cst_22 = arith.constant 1.000000e+00 : f32
    %33 = vector.broadcast %cst_22 : f32 to vector<8x128xf32>
    %34 = arith.addf %33, %32 : vector<8x128xf32>
    %35 = arith.divf %33, %34 : vector<8x128xf32>
    %c0_23 = arith.constant 0 : index
    %c256 = arith.constant 256 : index
    %36 = vector.load %arg13[%c0_23, %c256] : memref<64x384xf32, #tpu.memory_space<vmem>>, vector<8x128xf32>
    %37 = vector.extract_strided_slice %19 {offsets = [0, 256], sizes = [8, 128], strides = [1, 1]} : vector<8x384xf32> to vector<8x128xf32>
    %38 = arith.mulf %27, %37 : vector<8x128xf32>
    %39 = arith.addf %36, %38 : vector<8x128xf32>
    %40 = math.tanh %39 : vector<8x128xf32>
    %cst_24 = arith.constant 1.000000e+00 : f32
    %41 = vector.broadcast %cst_24 : f32 to vector<8x128xf32>
    %42 = arith.subf %41, %35 : vector<8x128xf32>
    %43 = arith.mulf %42, %40 : vector<8x128xf32>
    %44 = arith.mulf %35, %15 : vector<8x128xf32>
    %45 = arith.addf %43, %44 : vector<8x128xf32>
    %c0_i32_25 = arith.constant 0 : i32
    %46 = arith.addi %4, %c0_i32_25 : i32
    %47 = vector.broadcast %46 : i32 to vector<8x1xi32>
    %48 = arith.cmpi sgt, %3, %47 : vector<8x1xi32>
    %49 = vector.shape_cast %48 : vector<8x1xi1> to vector<8x1xi1>
    %50 = vector.broadcast %49 : vector<8x1xi1> to vector<8x128xi1>
    %51 = arith.select %50, %45, %15 : vector<8x128xi1>, vector<8x128xf32>
    %cst_26 = arith.constant 0.000000e+00 : f32
    %52 = vector.shape_cast %48 : vector<8x1xi1> to vector<8x1xi1>
    %53 = vector.broadcast %52 : vector<8x1xi1> to vector<8x128xi1>
    %54 = vector.broadcast %cst_26 : f32 to vector<8x128xf32>
    %55 = arith.select %53, %45, %54 : vector<8x128xi1>, vector<8x128xf32>
    %c0_27 = arith.constant 0 : index
    %c0_28 = arith.constant 0 : index
    %56 = vector.load %arg14[%c0_27, %c0_28] : memref<64x128xf32, #tpu.memory_space<vmem>>, vector<8x128xf32>
    tpu.vector_store %arg14[%c0_27, %c0_28], %55 {strides = array<i32>} : memref<64x128xf32, #tpu.memory_space<vmem>>, vector<8x128xf32>,
    %57 = arith.truncf %51 : vector<8x128xf32> to vector<8x128xbf16>
    %cst_29 = arith.constant dense<0.000000e+00> : vector<8x384xf32>
    %58 = tpu.matmul %57, %13, %cst_29 {dimension_numbers = #tpu.dot_dimension_numbers<[1], [0], [0], [1], [0, 0, 1, 1], [], []>} : vector<8x128xbf16>, vector<128x384xbf16>, vector<8x384xf32> -> vector<8x384xf32>
    %59 = vector.broadcast %14 : vector<1x384xf32> to vector<8x384xf32>
    %60 = arith.addf %58, %59 : vector<8x384xf32>
    %c8 = arith.constant 8 : index
    %c0_30 = arith.constant 0 : index
    %61 = vector.load %arg13[%c8, %c0_30] : memref<64x384xf32, #tpu.memory_space<vmem>>, vector<8x128xf32>
    %62 = vector.extract_strided_slice %60 {offsets = [0, 0], sizes = [8, 128], strides = [1, 1]} : vector<8x384xf32> to vector<8x128xf32>
    %63 = arith.addf %61, %62 : vector<8x128xf32>
    %64 = arith.negf %63 : vector<8x128xf32>
    %65 = math.exp %64 : vector<8x128xf32>
    %cst_31 = arith.constant 1.000000e+00 : f32
    %66 = vector.broadcast %cst_31 : f32 to vector<8x128xf32>
    %67 = arith.addf %66, %65 : vector<8x128xf32>
    %68 = arith.divf %66, %67 : vector<8x128xf32>
    %c8_32 = arith.constant 8 : index
    %c128_33 = arith.constant 128 : index
    %69 = vector.load %arg13[%c8_32, %c128_33] : memref<64x384xf32, #tpu.memory_space<vmem>>, vector<8x128xf32>
    %70 = vector.extract_strided_slice %60 {offsets = [0, 128], sizes = [8, 128], strides = [1, 1]} : vector<8x384xf32> to vector<8x128xf32>
    %71 = arith.addf %69, %70 : vector<8x128xf32>
    %72 = arith.negf %71 : vector<8x128xf32>
    %73 = math.exp %72 : vector<8x128xf32>
    %cst_34 = arith.constant 1.000000e+00 : f32
    %74 = vector.broadcast %cst_34 : f32 to vector<8x128xf32>
    %75 = arith.addf %74, %73 : vector<8x128xf32>
    %76 = arith.divf %74, %75 : vector<8x128xf32>
    %c8_35 = arith.constant 8 : index
    %c256_36 = arith.constant 256 : index
    %77 = vector.load %arg13[%c8_35, %c256_36] : memref<64x384xf32, #tpu.memory_space<vmem>>, vector<8x128xf32>
    %78 = vector.extract_strided_slice %60 {offsets = [0, 256], sizes = [8, 128], strides = [1, 1]} : vector<8x384xf32> to vector<8x128xf32>
    %79 = arith.mulf %68, %78 : vector<8x128xf32>
    %80 = arith.addf %77, %79 : vector<8x128xf32>
    %81 = math.tanh %80 : vector<8x128xf32>
    %cst_37 = arith.constant 1.000000e+00 : f32
    %82 = vector.broadcast %cst_37 : f32 to vector<8x128xf32>
    %83 = arith.subf %82, %76 : vector<8x128xf32>
    %84 = arith.mulf %83, %81 : vector<8x128xf32>
    %85 = arith.mulf %76, %51 : vector<8x128xf32>
    %86 = arith.addf %84, %85 : vector<8x128xf32>
    %c1_i32 = arith.constant 1 : i32
    %87 = arith.addi %4, %c1_i32 : i32
    %88 = vector.broadcast %87 : i32 to vector<8x1xi32>
    %89 = arith.cmpi sgt, %3, %88 : vector<8x1xi32>
    %90 = vector.shape_cast %89 : vector<8x1xi1> to vector<8x1xi1>
    %91 = vector.broadcast %90 : vector<8x1xi1> to vector<8x128xi1>
    %92 = arith.select %91, %86, %51 : vector<8x128xi1>, vector<8x128xf32>
    %cst_38 = arith.constant 0.000000e+00 : f32
    %93 = vector.shape_cast %89 : vector<8x1xi1> to vector<8x1xi1>
    %94 = vector.broadcast %93 : vector<8x1xi1> to vector<8x128xi1>
    %95 = vector.broadcast %cst_38 : f32 to vector<8x128xf32>
    %96 = arith.select %94, %86, %95 : vector<8x128xi1>, vector<8x128xf32>
    %c8_39 = arith.constant 8 : index
    %c0_40 = arith.constant 0 : index
    %97 = vector.load %arg14[%c8_39, %c0_40] : memref<64x128xf32, #tpu.memory_space<vmem>>, vector<8x128xf32>
    tpu.vector_store %arg14[%c8_39, %c0_40], %96 {strides = array<i32>} : memref<64x128xf32, #tpu.memory_space<vmem>>, vector<8x128xf32>,
    %98 = arith.truncf %92 : vector<8x128xf32> to vector<8x128xbf16>
    %cst_41 = arith.constant dense<0.000000e+00> : vector<8x384xf32>
    %99 = tpu.matmul %98, %13, %cst_41 {dimension_numbers = #tpu.dot_dimension_numbers<[1], [0], [0], [1], [0, 0, 1, 1], [], []>} : vector<8x128xbf16>, vector<128x384xbf16>, vector<8x384xf32> -> vector<8x384xf32>
    %100 = vector.broadcast %14 : vector<1x384xf32> to vector<8x384xf32>
    %101 = arith.addf %99, %100 : vector<8x384xf32>
    %c16 = arith.constant 16 : index
    %c0_42 = arith.constant 0 : index
    %102 = vector.load %arg13[%c16, %c0_42] : memref<64x384xf32, #tpu.memory_space<vmem>>, vector<8x128xf32>
    %103 = vector.extract_strided_slice %101 {offsets = [0, 0], sizes = [8, 128], strides = [1, 1]} : vector<8x384xf32> to vector<8x128xf32>
    %104 = arith.addf %102, %103 : vector<8x128xf32>
    %105 = arith.negf %104 : vector<8x128xf32>
    %106 = math.exp %105 : vector<8x128xf32>
    %cst_43 = arith.constant 1.000000e+00 : f32
    %107 = vector.broadcast %cst_43 : f32 to vector<8x128xf32>
    %108 = arith.addf %107, %106 : vector<8x128xf32>
    %109 = arith.divf %107, %108 : vector<8x128xf32>
    %c16_44 = arith.constant 16 : index
    %c128_45 = arith.constant 128 : index
    %110 = vector.load %arg13[%c16_44, %c128_45] : memref<64x384xf32, #tpu.memory_space<vmem>>, vector<8x128xf32>
    %111 = vector.extract_strided_slice %101 {offsets = [0, 128], sizes = [8, 128], strides = [1, 1]} : vector<8x384xf32> to vector<8x128xf32>
    %112 = arith.addf %110, %111 : vector<8x128xf32>
    %113 = arith.negf %112 : vector<8x128xf32>
    %114 = math.exp %113 : vector<8x128xf32>
    %cst_46 = arith.constant 1.000000e+00 : f32
    %115 = vector.broadcast %cst_46 : f32 to vector<8x128xf32>
    %116 = arith.addf %115, %114 : vector<8x128xf32>
    %117 = arith.divf %115, %116 : vector<8x128xf32>
    %c16_47 = arith.constant 16 : index
    %c256_48 = arith.constant 256 : index
    %118 = vector.load %arg13[%c16_47, %c256_48] : memref<64x384xf32, #tpu.memory_space<vmem>>, vector<8x128xf32>
    %119 = vector.extract_strided_slice %101 {offsets = [0, 256], sizes = [8, 128], strides = [1, 1]} : vector<8x384xf32> to vector<8x128xf32>
    %120 = arith.mulf %109, %119 : vector<8x128xf32>
    %121 = arith.addf %118, %120 : vector<8x128xf32>
    %122 = math.tanh %121 : vector<8x128xf32>
    %cst_49 = arith.constant 1.000000e+00 : f32
    %123 = vector.broadcast %cst_49 : f32 to vector<8x128xf32>
    %124 = arith.subf %123, %117 : vector<8x128xf32>
    %125 = arith.mulf %124, %122 : vector<8x128xf32>
    %126 = arith.mulf %117, %92 : vector<8x128xf32>
    %127 = arith.addf %125, %126 : vector<8x128xf32>
    %c2_i32 = arith.constant 2 : i32
    %128 = arith.addi %4, %c2_i32 : i32
    %129 = vector.broadcast %128 : i32 to vector<8x1xi32>
    %130 = arith.cmpi sgt, %3, %129 : vector<8x1xi32>
    %131 = vector.shape_cast %130 : vector<8x1xi1> to vector<8x1xi1>
    %132 = vector.broadcast %131 : vector<8x1xi1> to vector<8x128xi1>
    %133 = arith.select %132, %127, %92 : vector<8x128xi1>, vector<8x128xf32>
    %cst_50 = arith.constant 0.000000e+00 : f32
    %134 = vector.shape_cast %130 : vector<8x1xi1> to vector<8x1xi1>
    %135 = vector.broadcast %134 : vector<8x1xi1> to vector<8x128xi1>
    %136 = vector.broadcast %cst_50 : f32 to vector<8x128xf32>
    %137 = arith.select %135, %127, %136 : vector<8x128xi1>, vector<8x128xf32>
    %c16_51 = arith.constant 16 : index
    %c0_52 = arith.constant 0 : index
    %138 = vector.load %arg14[%c16_51, %c0_52] : memref<64x128xf32, #tpu.memory_space<vmem>>, vector<8x128xf32>
    tpu.vector_store %arg14[%c16_51, %c0_52], %137 {strides = array<i32>} : memref<64x128xf32, #tpu.memory_space<vmem>>, vector<8x128xf32>,
    %139 = arith.truncf %133 : vector<8x128xf32> to vector<8x128xbf16>
    %cst_53 = arith.constant dense<0.000000e+00> : vector<8x384xf32>
    %140 = tpu.matmul %139, %13, %cst_53 {dimension_numbers = #tpu.dot_dimension_numbers<[1], [0], [0], [1], [0, 0, 1, 1], [], []>} : vector<8x128xbf16>, vector<128x384xbf16>, vector<8x384xf32> -> vector<8x384xf32>
    %141 = vector.broadcast %14 : vector<1x384xf32> to vector<8x384xf32>
    %142 = arith.addf %140, %141 : vector<8x384xf32>
    %c24 = arith.constant 24 : index
    %c0_54 = arith.constant 0 : index
    %143 = vector.load %arg13[%c24, %c0_54] : memref<64x384xf32, #tpu.memory_space<vmem>>, vector<8x128xf32>
    %144 = vector.extract_strided_slice %142 {offsets = [0, 0], sizes = [8, 128], strides = [1, 1]} : vector<8x384xf32> to vector<8x128xf32>
    %145 = arith.addf %143, %144 : vector<8x128xf32>
    %146 = arith.negf %145 : vector<8x128xf32>
    %147 = math.exp %146 : vector<8x128xf32>
    %cst_55 = arith.constant 1.000000e+00 : f32
    %148 = vector.broadcast %cst_55 : f32 to vector<8x128xf32>
    %149 = arith.addf %148, %147 : vector<8x128xf32>
    %150 = arith.divf %148, %149 : vector<8x128xf32>
    %c24_56 = arith.constant 24 : index
    %c128_57 = arith.constant 128 : index
    %151 = vector.load %arg13[%c24_56, %c128_57] : memref<64x384xf32, #tpu.memory_space<vmem>>, vector<8x128xf32>
    %152 = vector.extract_strided_slice %142 {offsets = [0, 128], sizes = [8, 128], strides = [1, 1]} : vector<8x384xf32> to vector<8x128xf32>
    %153 = arith.addf %151, %152 : vector<8x128xf32>
    %154 = arith.negf %153 : vector<8x128xf32>
    %155 = math.exp %154 : vector<8x128xf32>
    %cst_58 = arith.constant 1.000000e+00 : f32
    %156 = vector.broadcast %cst_58 : f32 to vector<8x128xf32>
    %157 = arith.addf %156, %155 : vector<8x128xf32>
    %158 = arith.divf %156, %157 : vector<8x128xf32>
    %c24_59 = arith.constant 24 : index
    %c256_60 = arith.constant 256 : index
    %159 = vector.load %arg13[%c24_59, %c256_60] : memref<64x384xf32, #tpu.memory_space<vmem>>, vector<8x128xf32>
    %160 = vector.extract_strided_slice %142 {offsets = [0, 256], sizes = [8, 128], strides = [1, 1]} : vector<8x384xf32> to vector<8x128xf32>
    %161 = arith.mulf %150, %160 : vector<8x128xf32>
    %162 = arith.addf %159, %161 : vector<8x128xf32>
    %163 = math.tanh %162 : vector<8x128xf32>
    %cst_61 = arith.constant 1.000000e+00 : f32
    %164 = vector.broadcast %cst_61 : f32 to vector<8x128xf32>
    %165 = arith.subf %164, %158 : vector<8x128xf32>
    %166 = arith.mulf %165, %163 : vector<8x128xf32>
    %167 = arith.mulf %158, %133 : vector<8x128xf32>
    %168 = arith.addf %166, %167 : vector<8x128xf32>
    %c3_i32 = arith.constant 3 : i32
    %169 = arith.addi %4, %c3_i32 : i32
    %170 = vector.broadcast %169 : i32 to vector<8x1xi32>
    %171 = arith.cmpi sgt, %3, %170 : vector<8x1xi32>
    %172 = vector.shape_cast %171 : vector<8x1xi1> to vector<8x1xi1>
    %173 = vector.broadcast %172 : vector<8x1xi1> to vector<8x128xi1>
    %174 = arith.select %173, %168, %133 : vector<8x128xi1>, vector<8x128xf32>
    %cst_62 = arith.constant 0.000000e+00 : f32
    %175 = vector.shape_cast %171 : vector<8x1xi1> to vector<8x1xi1>
    %176 = vector.broadcast %175 : vector<8x1xi1> to vector<8x128xi1>
    %177 = vector.broadcast %cst_62 : f32 to vector<8x128xf32>
    %178 = arith.select %176, %168, %177 : vector<8x128xi1>, vector<8x128xf32>
    %c24_63 = arith.constant 24 : index
    %c0_64 = arith.constant 0 : index
    %179 = vector.load %arg14[%c24_63, %c0_64] : memref<64x128xf32, #tpu.memory_space<vmem>>, vector<8x128xf32>
    tpu.vector_store %arg14[%c24_63, %c0_64], %178 {strides = array<i32>} : memref<64x128xf32, #tpu.memory_space<vmem>>, vector<8x128xf32>,
    %180 = arith.truncf %174 : vector<8x128xf32> to vector<8x128xbf16>
    %cst_65 = arith.constant dense<0.000000e+00> : vector<8x384xf32>
    %181 = tpu.matmul %180, %13, %cst_65 {dimension_numbers = #tpu.dot_dimension_numbers<[1], [0], [0], [1], [0, 0, 1, 1], [], []>} : vector<8x128xbf16>, vector<128x384xbf16>, vector<8x384xf32> -> vector<8x384xf32>
    %182 = vector.broadcast %14 : vector<1x384xf32> to vector<8x384xf32>
    %183 = arith.addf %181, %182 : vector<8x384xf32>
    %c32 = arith.constant 32 : index
    %c0_66 = arith.constant 0 : index
    %184 = vector.load %arg13[%c32, %c0_66] : memref<64x384xf32, #tpu.memory_space<vmem>>, vector<8x128xf32>
    %185 = vector.extract_strided_slice %183 {offsets = [0, 0], sizes = [8, 128], strides = [1, 1]} : vector<8x384xf32> to vector<8x128xf32>
    %186 = arith.addf %184, %185 : vector<8x128xf32>
    %187 = arith.negf %186 : vector<8x128xf32>
    %188 = math.exp %187 : vector<8x128xf32>
    %cst_67 = arith.constant 1.000000e+00 : f32
    %189 = vector.broadcast %cst_67 : f32 to vector<8x128xf32>
    %190 = arith.addf %189, %188 : vector<8x128xf32>
    %191 = arith.divf %189, %190 : vector<8x128xf32>
    %c32_68 = arith.constant 32 : index
    %c128_69 = arith.constant 128 : index
    %192 = vector.load %arg13[%c32_68, %c128_69] : memref<64x384xf32, #tpu.memory_space<vmem>>, vector<8x128xf32>
    %193 = vector.extract_strided_slice %183 {offsets = [0, 128], sizes = [8, 128], strides = [1, 1]} : vector<8x384xf32> to vector<8x128xf32>
    %194 = arith.addf %192, %193 : vector<8x128xf32>
    %195 = arith.negf %194 : vector<8x128xf32>
    %196 = math.exp %195 : vector<8x128xf32>
    %cst_70 = arith.constant 1.000000e+00 : f32
    %197 = vector.broadcast %cst_70 : f32 to vector<8x128xf32>
    %198 = arith.addf %197, %196 : vector<8x128xf32>
    %199 = arith.divf %197, %198 : vector<8x128xf32>
    %c32_71 = arith.constant 32 : index
    %c256_72 = arith.constant 256 : index
    %200 = vector.load %arg13[%c32_71, %c256_72] : memref<64x384xf32, #tpu.memory_space<vmem>>, vector<8x128xf32>
    %201 = vector.extract_strided_slice %183 {offsets = [0, 256], sizes = [8, 128], strides = [1, 1]} : vector<8x384xf32> to vector<8x128xf32>
    %202 = arith.mulf %191, %201 : vector<8x128xf32>
    %203 = arith.addf %200, %202 : vector<8x128xf32>
    %204 = math.tanh %203 : vector<8x128xf32>
    %cst_73 = arith.constant 1.000000e+00 : f32
    %205 = vector.broadcast %cst_73 : f32 to vector<8x128xf32>
    %206 = arith.subf %205, %199 : vector<8x128xf32>
    %207 = arith.mulf %206, %204 : vector<8x128xf32>
    %208 = arith.mulf %199, %174 : vector<8x128xf32>
    %209 = arith.addf %207, %208 : vector<8x128xf32>
    %c4_i32 = arith.constant 4 : i32
    %210 = arith.addi %4, %c4_i32 : i32
    %211 = vector.broadcast %210 : i32 to vector<8x1xi32>
    %212 = arith.cmpi sgt, %3, %211 : vector<8x1xi32>
    %213 = vector.shape_cast %212 : vector<8x1xi1> to vector<8x1xi1>
    %214 = vector.broadcast %213 : vector<8x1xi1> to vector<8x128xi1>
    %215 = arith.select %214, %209, %174 : vector<8x128xi1>, vector<8x128xf32>
    %cst_74 = arith.constant 0.000000e+00 : f32
    %216 = vector.shape_cast %212 : vector<8x1xi1> to vector<8x1xi1>
    %217 = vector.broadcast %216 : vector<8x1xi1> to vector<8x128xi1>
    %218 = vector.broadcast %cst_74 : f32 to vector<8x128xf32>
    %219 = arith.select %217, %209, %218 : vector<8x128xi1>, vector<8x128xf32>
    %c32_75 = arith.constant 32 : index
    %c0_76 = arith.constant 0 : index
    %220 = vector.load %arg14[%c32_75, %c0_76] : memref<64x128xf32, #tpu.memory_space<vmem>>, vector<8x128xf32>
    tpu.vector_store %arg14[%c32_75, %c0_76], %219 {strides = array<i32>} : memref<64x128xf32, #tpu.memory_space<vmem>>, vector<8x128xf32>,
    %221 = arith.truncf %215 : vector<8x128xf32> to vector<8x128xbf16>
    %cst_77 = arith.constant dense<0.000000e+00> : vector<8x384xf32>
    %222 = tpu.matmul %221, %13, %cst_77 {dimension_numbers = #tpu.dot_dimension_numbers<[1], [0], [0], [1], [0, 0, 1, 1], [], []>} : vector<8x128xbf16>, vector<128x384xbf16>, vector<8x384xf32> -> vector<8x384xf32>
    %223 = vector.broadcast %14 : vector<1x384xf32> to vector<8x384xf32>
    %224 = arith.addf %222, %223 : vector<8x384xf32>
    %c40 = arith.constant 40 : index
    %c0_78 = arith.constant 0 : index
    %225 = vector.load %arg13[%c40, %c0_78] : memref<64x384xf32, #tpu.memory_space<vmem>>, vector<8x128xf32>
    %226 = vector.extract_strided_slice %224 {offsets = [0, 0], sizes = [8, 128], strides = [1, 1]} : vector<8x384xf32> to vector<8x128xf32>
    %227 = arith.addf %225, %226 : vector<8x128xf32>
    %228 = arith.negf %227 : vector<8x128xf32>
    %229 = math.exp %228 : vector<8x128xf32>
    %cst_79 = arith.constant 1.000000e+00 : f32
    %230 = vector.broadcast %cst_79 : f32 to vector<8x128xf32>
    %231 = arith.addf %230, %229 : vector<8x128xf32>
    %232 = arith.divf %230, %231 : vector<8x128xf32>
    %c40_80 = arith.constant 40 : index
    %c128_81 = arith.constant 128 : index
    %233 = vector.load %arg13[%c40_80, %c128_81] : memref<64x384xf32, #tpu.memory_space<vmem>>, vector<8x128xf32>
    %234 = vector.extract_strided_slice %224 {offsets = [0, 128], sizes = [8, 128], strides = [1, 1]} : vector<8x384xf32> to vector<8x128xf32>
    %235 = arith.addf %233, %234 : vector<8x128xf32>
    %236 = arith.negf %235 : vector<8x128xf32>
    %237 = math.exp %236 : vector<8x128xf32>
    %cst_82 = arith.constant 1.000000e+00 : f32
    %238 = vector.broadcast %cst_82 : f32 to vector<8x128xf32>
    %239 = arith.addf %238, %237 : vector<8x128xf32>
    %240 = arith.divf %238, %239 : vector<8x128xf32>
    %c40_83 = arith.constant 40 : index
    %c256_84 = arith.constant 256 : index
    %241 = vector.load %arg13[%c40_83, %c256_84] : memref<64x384xf32, #tpu.memory_space<vmem>>, vector<8x128xf32>
    %242 = vector.extract_strided_slice %224 {offsets = [0, 256], sizes = [8, 128], strides = [1, 1]} : vector<8x384xf32> to vector<8x128xf32>
    %243 = arith.mulf %232, %242 : vector<8x128xf32>
    %244 = arith.addf %241, %243 : vector<8x128xf32>
    %245 = math.tanh %244 : vector<8x128xf32>
    %cst_85 = arith.constant 1.000000e+00 : f32
    %246 = vector.broadcast %cst_85 : f32 to vector<8x128xf32>
    %247 = arith.subf %246, %240 : vector<8x128xf32>
    %248 = arith.mulf %247, %245 : vector<8x128xf32>
    %249 = arith.mulf %240, %215 : vector<8x128xf32>
    %250 = arith.addf %248, %249 : vector<8x128xf32>
    %c5_i32 = arith.constant 5 : i32
    %251 = arith.addi %4, %c5_i32 : i32
    %252 = vector.broadcast %251 : i32 to vector<8x1xi32>
    %253 = arith.cmpi sgt, %3, %252 : vector<8x1xi32>
    %254 = vector.shape_cast %253 : vector<8x1xi1> to vector<8x1xi1>
    %255 = vector.broadcast %254 : vector<8x1xi1> to vector<8x128xi1>
    %256 = arith.select %255, %250, %215 : vector<8x128xi1>, vector<8x128xf32>
    %cst_86 = arith.constant 0.000000e+00 : f32
    %257 = vector.shape_cast %253 : vector<8x1xi1> to vector<8x1xi1>
    %258 = vector.broadcast %257 : vector<8x1xi1> to vector<8x128xi1>
    %259 = vector.broadcast %cst_86 : f32 to vector<8x128xf32>
    %260 = arith.select %258, %250, %259 : vector<8x128xi1>, vector<8x128xf32>
    %c40_87 = arith.constant 40 : index
    %c0_88 = arith.constant 0 : index
    %261 = vector.load %arg14[%c40_87, %c0_88] : memref<64x128xf32, #tpu.memory_space<vmem>>, vector<8x128xf32>
    tpu.vector_store %arg14[%c40_87, %c0_88], %260 {strides = array<i32>} : memref<64x128xf32, #tpu.memory_space<vmem>>, vector<8x128xf32>,
    %262 = arith.truncf %256 : vector<8x128xf32> to vector<8x128xbf16>
    %cst_89 = arith.constant dense<0.000000e+00> : vector<8x384xf32>
    %263 = tpu.matmul %262, %13, %cst_89 {dimension_numbers = #tpu.dot_dimension_numbers<[1], [0], [0], [1], [0, 0, 1, 1], [], []>} : vector<8x128xbf16>, vector<128x384xbf16>, vector<8x384xf32> -> vector<8x384xf32>
    %264 = vector.broadcast %14 : vector<1x384xf32> to vector<8x384xf32>
    %265 = arith.addf %263, %264 : vector<8x384xf32>
    %c48 = arith.constant 48 : index
    %c0_90 = arith.constant 0 : index
    %266 = vector.load %arg13[%c48, %c0_90] : memref<64x384xf32, #tpu.memory_space<vmem>>, vector<8x128xf32>
    %267 = vector.extract_strided_slice %265 {offsets = [0, 0], sizes = [8, 128], strides = [1, 1]} : vector<8x384xf32> to vector<8x128xf32>
    %268 = arith.addf %266, %267 : vector<8x128xf32>
    %269 = arith.negf %268 : vector<8x128xf32>
    %270 = math.exp %269 : vector<8x128xf32>
    %cst_91 = arith.constant 1.000000e+00 : f32
    %271 = vector.broadcast %cst_91 : f32 to vector<8x128xf32>
    %272 = arith.addf %271, %270 : vector<8x128xf32>
    %273 = arith.divf %271, %272 : vector<8x128xf32>
    %c48_92 = arith.constant 48 : index
    %c128_93 = arith.constant 128 : index
    %274 = vector.load %arg13[%c48_92, %c128_93] : memref<64x384xf32, #tpu.memory_space<vmem>>, vector<8x128xf32>
    %275 = vector.extract_strided_slice %265 {offsets = [0, 128], sizes = [8, 128], strides = [1, 1]} : vector<8x384xf32> to vector<8x128xf32>
    %276 = arith.addf %274, %275 : vector<8x128xf32>
    %277 = arith.negf %276 : vector<8x128xf32>
    %278 = math.exp %277 : vector<8x128xf32>
    %cst_94 = arith.constant 1.000000e+00 : f32
    %279 = vector.broadcast %cst_94 : f32 to vector<8x128xf32>
    %280 = arith.addf %279, %278 : vector<8x128xf32>
    %281 = arith.divf %279, %280 : vector<8x128xf32>
    %c48_95 = arith.constant 48 : index
    %c256_96 = arith.constant 256 : index
    %282 = vector.load %arg13[%c48_95, %c256_96] : memref<64x384xf32, #tpu.memory_space<vmem>>, vector<8x128xf32>
    %283 = vector.extract_strided_slice %265 {offsets = [0, 256], sizes = [8, 128], strides = [1, 1]} : vector<8x384xf32> to vector<8x128xf32>
    %284 = arith.mulf %273, %283 : vector<8x128xf32>
    %285 = arith.addf %282, %284 : vector<8x128xf32>
    %286 = math.tanh %285 : vector<8x128xf32>
    %cst_97 = arith.constant 1.000000e+00 : f32
    %287 = vector.broadcast %cst_97 : f32 to vector<8x128xf32>
    %288 = arith.subf %287, %281 : vector<8x128xf32>
    %289 = arith.mulf %288, %286 : vector<8x128xf32>
    %290 = arith.mulf %281, %256 : vector<8x128xf32>
    %291 = arith.addf %289, %290 : vector<8x128xf32>
    %c6_i32 = arith.constant 6 : i32
    %292 = arith.addi %4, %c6_i32 : i32
    %293 = vector.broadcast %292 : i32 to vector<8x1xi32>
    %294 = arith.cmpi sgt, %3, %293 : vector<8x1xi32>
    %295 = vector.shape_cast %294 : vector<8x1xi1> to vector<8x1xi1>
    %296 = vector.broadcast %295 : vector<8x1xi1> to vector<8x128xi1>
    %297 = arith.select %296, %291, %256 : vector<8x128xi1>, vector<8x128xf32>
    %cst_98 = arith.constant 0.000000e+00 : f32
    %298 = vector.shape_cast %294 : vector<8x1xi1> to vector<8x1xi1>
    %299 = vector.broadcast %298 : vector<8x1xi1> to vector<8x128xi1>
    %300 = vector.broadcast %cst_98 : f32 to vector<8x128xf32>
    %301 = arith.select %299, %291, %300 : vector<8x128xi1>, vector<8x128xf32>
    %c48_99 = arith.constant 48 : index
    %c0_100 = arith.constant 0 : index
    %302 = vector.load %arg14[%c48_99, %c0_100] : memref<64x128xf32, #tpu.memory_space<vmem>>, vector<8x128xf32>
    tpu.vector_store %arg14[%c48_99, %c0_100], %301 {strides = array<i32>} : memref<64x128xf32, #tpu.memory_space<vmem>>, vector<8x128xf32>,
    %303 = arith.truncf %297 : vector<8x128xf32> to vector<8x128xbf16>
    %cst_101 = arith.constant dense<0.000000e+00> : vector<8x384xf32>
    %304 = tpu.matmul %303, %13, %cst_101 {dimension_numbers = #tpu.dot_dimension_numbers<[1], [0], [0], [1], [0, 0, 1, 1], [], []>} : vector<8x128xbf16>, vector<128x384xbf16>, vector<8x384xf32> -> vector<8x384xf32>
    %305 = vector.broadcast %14 : vector<1x384xf32> to vector<8x384xf32>
    %306 = arith.addf %304, %305 : vector<8x384xf32>
    %c56 = arith.constant 56 : index
    %c0_102 = arith.constant 0 : index
    %307 = vector.load %arg13[%c56, %c0_102] : memref<64x384xf32, #tpu.memory_space<vmem>>, vector<8x128xf32>
    %308 = vector.extract_strided_slice %306 {offsets = [0, 0], sizes = [8, 128], strides = [1, 1]} : vector<8x384xf32> to vector<8x128xf32>
    %309 = arith.addf %307, %308 : vector<8x128xf32>
    %310 = arith.negf %309 : vector<8x128xf32>
    %311 = math.exp %310 : vector<8x128xf32>
    %cst_103 = arith.constant 1.000000e+00 : f32
    %312 = vector.broadcast %cst_103 : f32 to vector<8x128xf32>
    %313 = arith.addf %312, %311 : vector<8x128xf32>
    %314 = arith.divf %312, %313 : vector<8x128xf32>
    %c56_104 = arith.constant 56 : index
    %c128_105 = arith.constant 128 : index
    %315 = vector.load %arg13[%c56_104, %c128_105] : memref<64x384xf32, #tpu.memory_space<vmem>>, vector<8x128xf32>
    %316 = vector.extract_strided_slice %306 {offsets = [0, 128], sizes = [8, 128], strides = [1, 1]} : vector<8x384xf32> to vector<8x128xf32>
    %317 = arith.addf %315, %316 : vector<8x128xf32>
    %318 = arith.negf %317 : vector<8x128xf32>
    %319 = math.exp %318 : vector<8x128xf32>
    %cst_106 = arith.constant 1.000000e+00 : f32
    %320 = vector.broadcast %cst_106 : f32 to vector<8x128xf32>
    %321 = arith.addf %320, %319 : vector<8x128xf32>
    %322 = arith.divf %320, %321 : vector<8x128xf32>
    %c56_107 = arith.constant 56 : index
    %c256_108 = arith.constant 256 : index
    %323 = vector.load %arg13[%c56_107, %c256_108] : memref<64x384xf32, #tpu.memory_space<vmem>>, vector<8x128xf32>
    %324 = vector.extract_strided_slice %306 {offsets = [0, 256], sizes = [8, 128], strides = [1, 1]} : vector<8x384xf32> to vector<8x128xf32>
    %325 = arith.mulf %314, %324 : vector<8x128xf32>
    %326 = arith.addf %323, %325 : vector<8x128xf32>
    %327 = math.tanh %326 : vector<8x128xf32>
    %cst_109 = arith.constant 1.000000e+00 : f32
    %328 = vector.broadcast %cst_109 : f32 to vector<8x128xf32>
    %329 = arith.subf %328, %322 : vector<8x128xf32>
    %330 = arith.mulf %329, %327 : vector<8x128xf32>
    %331 = arith.mulf %322, %297 : vector<8x128xf32>
    %332 = arith.addf %330, %331 : vector<8x128xf32>
    %c7_i32 = arith.constant 7 : i32
    %333 = arith.addi %4, %c7_i32 : i32
    %334 = vector.broadcast %333 : i32 to vector<8x1xi32>
    %335 = arith.cmpi sgt, %3, %334 : vector<8x1xi32>
    %336 = vector.shape_cast %335 : vector<8x1xi1> to vector<8x1xi1>
    %337 = vector.broadcast %336 : vector<8x1xi1> to vector<8x128xi1>
    %338 = arith.select %337, %332, %297 : vector<8x128xi1>, vector<8x128xf32>
    %cst_110 = arith.constant 0.000000e+00 : f32
    %339 = vector.shape_cast %335 : vector<8x1xi1> to vector<8x1xi1>
    %340 = vector.broadcast %339 : vector<8x1xi1> to vector<8x128xi1>
    %341 = vector.broadcast %cst_110 : f32 to vector<8x128xf32>
    %342 = arith.select %340, %332, %341 : vector<8x128xi1>, vector<8x128xf32>
    %c56_111 = arith.constant 56 : index
    %c0_112 = arith.constant 0 : index
    %343 = vector.load %arg14[%c56_111, %c0_112] : memref<64x128xf32, #tpu.memory_space<vmem>>, vector<8x128xf32>
    tpu.vector_store %arg14[%c56_111, %c0_112], %342 {strides = array<i32>} : memref<64x128xf32, #tpu.memory_space<vmem>>, vector<8x128xf32>,
    %c0_113 = arith.constant 0 : index
    %c0_114 = arith.constant 0 : index
    %344 = vector.load %arg12[%c0_113, %c0_114] : memref<8x128xf32, #tpu.memory_space<vmem>>, vector<8x128xf32>
    tpu.vector_store %arg12[%c0_113, %c0_114], %338 {strides = array<i32>} : memref<8x128xf32, #tpu.memory_space<vmem>>, vector<8x128xf32>,
    %c0_115 = arith.constant 0 : index
    %c0_116 = arith.constant 0 : index
    %345 = vector.load %arg14[%c0_115, %c0_116] : memref<64x128xf32, #tpu.memory_space<vmem>>, vector<64x128xf32>
    %346 = arith.truncf %345 : vector<64x128xf32> to vector<64x128xbf16>
    %c0_117 = arith.constant 0 : index
    %c0_118 = arith.constant 0 : index
    %347 = vector.load %arg9[%c0_117, %c0_118] : memref<128x128xbf16, #tpu.memory_space<vmem>>, vector<128x128xbf16>
    %cst_119 = arith.constant dense<0.000000e+00> : vector<64x128xf32>
    %348 = tpu.matmul %346, %347, %cst_119 {dimension_numbers = #tpu.dot_dimension_numbers<[1], [0], [0], [1], [0, 0, 1, 1], [], []>} : vector<64x128xbf16>, vector<128x128xbf16>, vector<64x128xf32> -> vector<64x128xf32>
    %c0_120 = arith.constant 0 : index
    %c0_121 = arith.constant 0 : index
    %349 = vector.load %arg10[%c0_120, %c0_121] : memref<1x128xf32, #tpu.memory_space<vmem>>, vector<1x128xf32>
    %350 = vector.broadcast %349 : vector<1x128xf32> to vector<64x128xf32>
    %351 = arith.addf %348, %350 : vector<64x128xf32>
    %cst_122 = arith.constant dense<0xFF800000> : vector<64xf32>
    %352 = vector.multi_reduction <maximumf>, %351, %cst_122 [1] : vector<64x128xf32> to vector<64xf32>
    %353 = vector.shape_cast %352 : vector<64xf32> to vector<64x1xf32>
    %354 = vector.broadcast %353 : vector<64x1xf32> to vector<64x128xf32>
    %355 = arith.subf %351, %354 : vector<64x128xf32>
    %356 = math.exp %355 : vector<64x128xf32>
    %cst_123 = arith.constant dense<0.000000e+00> : vector<64xf32>
    %357 = vector.multi_reduction <add>, %356, %cst_123 [1] : vector<64x128xf32> to vector<64xf32>
    %358 = vector.shape_cast %357 : vector<64xf32> to vector<64x1xf32>
    %359 = math.log %358 : vector<64x1xf32>
    %360 = vector.broadcast %359 : vector<64x1xf32> to vector<64x128xf32>
    %361 = arith.subf %355, %360 : vector<64x128xf32>
    %362 = vector.extract_strided_slice %361 {offsets = [0, 0], sizes = [8, 128], strides = [1, 1]} : vector<64x128xf32> to vector<8x128xf32>
    %c0_124 = arith.constant 0 : index
    %c0_125 = arith.constant 0 : index
    %363 = vector.load %arg11[%c0_124, %c0_125] : memref<8x1024xf32, #tpu.memory_space<vmem>>, vector<8x128xf32>
    tpu.vector_store %arg11[%c0_124, %c0_125], %362 {strides = array<i32>} : memref<8x1024xf32, #tpu.memory_space<vmem>>, vector<8x128xf32>,
    %364 = vector.extract_strided_slice %361 {offsets = [8, 0], sizes = [8, 128], strides = [1, 1]} : vector<64x128xf32> to vector<8x128xf32>
    %c0_126 = arith.constant 0 : index
    %c128_127 = arith.constant 128 : index
    %365 = vector.load %arg11[%c0_126, %c128_127] : memref<8x1024xf32, #tpu.memory_space<vmem>>, vector<8x128xf32>
    tpu.vector_store %arg11[%c0_126, %c128_127], %364 {strides = array<i32>} : memref<8x1024xf32, #tpu.memory_space<vmem>>, vector<8x128xf32>,
    %366 = vector.extract_strided_slice %361 {offsets = [16, 0], sizes = [8, 128], strides = [1, 1]} : vector<64x128xf32> to vector<8x128xf32>
    %c0_128 = arith.constant 0 : index
    %c256_129 = arith.constant 256 : index
    %367 = vector.load %arg11[%c0_128, %c256_129] : memref<8x1024xf32, #tpu.memory_space<vmem>>, vector<8x128xf32>
    tpu.vector_store %arg11[%c0_128, %c256_129], %366 {strides = array<i32>} : memref<8x1024xf32, #tpu.memory_space<vmem>>, vector<8x128xf32>,
    %368 = vector.extract_strided_slice %361 {offsets = [24, 0], sizes = [8, 128], strides = [1, 1]} : vector<64x128xf32> to vector<8x128xf32>
    %c0_130 = arith.constant 0 : index
    %c384 = arith.constant 384 : index
    %369 = vector.load %arg11[%c0_130, %c384] : memref<8x1024xf32, #tpu.memory_space<vmem>>, vector<8x128xf32>
    tpu.vector_store %arg11[%c0_130, %c384], %368 {strides = array<i32>} : memref<8x1024xf32, #tpu.memory_space<vmem>>, vector<8x128xf32>,
    %370 = vector.extract_strided_slice %361 {offsets = [32, 0], sizes = [8, 128], strides = [1, 1]} : vector<64x128xf32> to vector<8x128xf32>
    %c0_131 = arith.constant 0 : index
    %c512 = arith.constant 512 : index
    %371 = vector.load %arg11[%c0_131, %c512] : memref<8x1024xf32, #tpu.memory_space<vmem>>, vector<8x128xf32>
    tpu.vector_store %arg11[%c0_131, %c512], %370 {strides = array<i32>} : memref<8x1024xf32, #tpu.memory_space<vmem>>, vector<8x128xf32>,
    %372 = vector.extract_strided_slice %361 {offsets = [40, 0], sizes = [8, 128], strides = [1, 1]} : vector<64x128xf32> to vector<8x128xf32>
    %c0_132 = arith.constant 0 : index
    %c640 = arith.constant 640 : index
    %373 = vector.load %arg11[%c0_132, %c640] : memref<8x1024xf32, #tpu.memory_space<vmem>>, vector<8x128xf32>
    tpu.vector_store %arg11[%c0_132, %c640], %372 {strides = array<i32>} : memref<8x1024xf32, #tpu.memory_space<vmem>>, vector<8x128xf32>,
    %374 = vector.extract_strided_slice %361 {offsets = [48, 0], sizes = [8, 128], strides = [1, 1]} : vector<64x128xf32> to vector<8x128xf32>
    %c0_133 = arith.constant 0 : index
    %c768 = arith.constant 768 : index
    %375 = vector.load %arg11[%c0_133, %c768] : memref<8x1024xf32, #tpu.memory_space<vmem>>, vector<8x128xf32>
    tpu.vector_store %arg11[%c0_133, %c768], %374 {strides = array<i32>} : memref<8x1024xf32, #tpu.memory_space<vmem>>, vector<8x128xf32>,
    %376 = vector.extract_strided_slice %361 {offsets = [56, 0], sizes = [8, 128], strides = [1, 1]} : vector<64x128xf32> to vector<8x128xf32>
    %c0_134 = arith.constant 0 : index
    %c896 = arith.constant 896 : index
    %377 = vector.load %arg11[%c0_134, %c896] : memref<8x1024xf32, #tpu.memory_space<vmem>>, vector<8x128xf32>
    tpu.vector_store %arg11[%c0_134, %c896], %376 {strides = array<i32>} : memref<8x1024xf32, #tpu.memory_space<vmem>>, vector<8x128xf32>,
    return
  }
  func.func @transform_0(%arg0: i32, %arg1: i32) -> (i32, i32) {
    %c0_i32 = arith.constant 0 : i32
    %c0_i32_0 = arith.constant 0 : i32
    return %arg0, %c0_i32 : i32, i32
  }
  func.func @transform_1(%arg0: i32, %arg1: i32) -> (i32, i32, i32) {
    %c0_i32 = arith.constant 0 : i32
    %c0_i32_0 = arith.constant 0 : i32
    return %arg1, %arg0, %c0_i32 : i32, i32, i32
  }
  func.func @transform_2(%arg0: i32, %arg1: i32) -> (i32, i32) {
    %c0_i32 = arith.constant 0 : i32
    %c0_i32_0 = arith.constant 0 : i32
    return %arg0, %c0_i32 : i32, i32
  }
  func.func @transform_3(%arg0: i32, %arg1: i32) -> (i32, i32) {
    %c0_i32 = arith.constant 0 : i32
    %c0_i32_0 = arith.constant 0 : i32
    %c0_i32_1 = arith.constant 0 : i32
    return %c0_i32, %c0_i32_0 : i32, i32
  }
  func.func @transform_4(%arg0: i32, %arg1: i32) -> (i32, i32) {
    %c0_i32 = arith.constant 0 : i32
    %c0_i32_0 = arith.constant 0 : i32
    %c0_i32_1 = arith.constant 0 : i32
    return %c0_i32, %c0_i32_0 : i32, i32
  }
  func.func @transform_5(%arg0: i32, %arg1: i32) -> (i32, i32) {
    %c0_i32 = arith.constant 0 : i32
    %c0_i32_0 = arith.constant 0 : i32
    %c0_i32_1 = arith.constant 0 : i32
    return %c0_i32, %c0_i32_0 : i32, i32
  }
  func.func @transform_6(%arg0: i32, %arg1: i32) -> (i32, i32) {
    %c0_i32 = arith.constant 0 : i32
    %c0_i32_0 = arith.constant 0 : i32
    %c0_i32_1 = arith.constant 0 : i32
    return %c0_i32, %c0_i32_0 : i32, i32
  }
  func.func @transform_7(%arg0: i32, %arg1: i32) -> (i32, i32) {
    %c0_i32 = arith.constant 0 : i32
    %c0_i32_0 = arith.constant 0 : i32
    %c0_i32_1 = arith.constant 0 : i32
    return %c0_i32, %c0_i32_0 : i32, i32
  }
  func.func @transform_8(%arg0: i32, %arg1: i32) -> (i32, i32) {
    %c0_i32 = arith.constant 0 : i32
    %c0_i32_0 = arith.constant 0 : i32
    %c0_i32_1 = arith.constant 0 : i32
    return %c0_i32, %c0_i32_0 : i32, i32
  }
  func.func @transform_9(%arg0: i32, %arg1: i32) -> (i32, i32) {
    %c0_i32 = arith.constant 0 : i32
    return %arg0, %arg1 : i32, i32
  }
  func.func @transform_10(%arg0: i32, %arg1: i32) -> (i32, i32) {
    %c0_i32 = arith.constant 0 : i32
    %c0_i32_0 = arith.constant 0 : i32
    return %arg0, %c0_i32 : i32, i32
  }
}

</mosaic_0001>

<bundles_post_ra>
// kernel: rnn_decoder_forward.1
= control target key start
LH: loop header
LB: loop body
LE: loop exit
PB: predicated region body
PF: predicated region fallthrough
CT: control target
= control target key end

     0   :  { %vm108_vm0 = vcmask 130048   ;;  %v3145_v1 = vmov 0   ;;  %v3147_v34 = vmov 0.0   ;;  %vm2191_vm9 = vmmov 0   ;;  %s3134_s3 = inlined_call_operand.vmem [shape: bf16[16,384], index: 3, kind: input, shape index: {}]   ;;  %s3135_s1 = inlined_call_operand.vmem [shape: bf16[8,8,16], index: 1, kind: input, shape index: {}]   ;;  %s3136_s4 = inlined_call_operand.vmem [shape: bf16[128,384], index: 4, kind: input, shape index: {}]   ;;  %s3137_s0 = inlined_call_operand.vmem [shape: s32[8,1], index: 0, kind: input, shape index: {}]   ;;  %s3138_s2 = inlined_call_operand.vmem [shape: f32[8,128], index: 2, kind: input, shape index: {}]   ;;  %s3139_s5 = inlined_call_operand.vmem [shape: f32[1,384], index: 5, kind: input, shape index: {}]   ;;  %s3140_s6 = inlined_call_operand.vmem [shape: f32[1,384], index: 6, kind: input, shape index: {}]   ;;  %s3141_s7 = inlined_call_operand.vmem [shape: bf16[128,128], index: 7, kind: input, shape index: {}]   ;;  %s3142_s8 = inlined_call_operand.vmem [shape: f32[1,128], index: 8, kind: input, shape index: {}]   ;;  %s3143_s10 = inlined_call_operand.vmem [shape: f32[8,128], index: 10, kind: output, shape index: {1}]   ;;  %s3144_s9 = inlined_call_operand.vmem [shape: f32[8,1024], index: 9, kind: output, shape index: {0}]  }
   0x1   :  { %v2005_v0 = vld [vmem:[%s3134_s3 + $0x8] ss:$12 sps:$4 sm:$0xff]   ;;  %153 = vmatprep.mubr.bf16.mxu0 %v3145_v1  ;;  %2004 = vset.pattern.permute.xlu1 %v3145_v1  ;;  %v2006_v2 = vld [vmem:[%s3135_s1] sm:$0xff]   ;;  %v2263_v4 = vld [vmem:[%s3136_s4 + $0xac] ss:$12 sps:$4 sm:$0xff]   ;;  %v57_v44 = vlaneseq }
   0x2   :  { %2003 = vset.pattern.permute.xlu0 %v3145_v1  ;;  %1806 = vmatprep.subr.bf16.mxu1 %v2005_v0  ;;  %v2007_v3 = vld [vmem:[%s3135_s1 + $0x8] sm:$0xff]   ;;  %v2274_v6 = vld [vmem:[%s3136_s4 + $0x94] ss:$12 sps:$4 sm:$0xff]   ;;  %v2281_v7 = vld [vmem:[%s3136_s4 + $0x90] ss:$12 sps:$4 sm:$0xff]  }
   0x3   :  { %1807 = vmatpush3.bf16.msra.mxu1 %v2005_v0  ;;  %1808 = vmatprep.mubr.msk.bf16.mxu1 %vm108_vm0, %v2006_v2  ;;  %v2268_v5 = vld [vmem:[%s3136_s4 + $0xa8] ss:$12 sps:$4 sm:$0xff]   ;;  %v2292_v9 = vld [vmem:[%s3136_s4 + $0x78] ss:$12 sps:$4 sm:$0xff]   ;;  %v2030_v14 = vld [vmem:[%s3134_s3] ss:$12 sps:$4 sm:$0xff]  }
   0x4   :  { %462 = vmatprep.subr.bf16.mxu1 %v2263_v4  ;;  %v2287_v8 = vld [vmem:[%s3136_s4 + $0x7c] ss:$12 sps:$4 sm:$0xff]   ;;  %v2297_v10 = vld [vmem:[%s3135_s1 + $0x10] sm:$0xff]   ;;  %v2325_v15 = vld [vmem:[%s3136_s4 + $0x60] ss:$12 sps:$4 sm:$0xff]   ;;  %v2500_v45 = vshrl.u32 %v57_v44, 7 }
   0x5   :  { %v2303_v11 = vld [vmem:[%s3135_s1 + $0x18] sm:$0xff]   ;;  %v2309_v12 = vld [vmem:[%s3136_s4 + $0x64] ss:$12 sps:$4 sm:$0xff]   ;;  %v2339_v17 = vld [vmem:[%s3136_s4 + $0x48] ss:$12 sps:$4 sm:$0xff]  }
   0x6   :  { %1809 = vmatmul.mubr.msk.bf16.vlgmr.msra.gmra.mxu1 %vm108_vm0, %v2007_v3  ;;  %v2028_v13 = vld [vmem:[%s3134_s3 + $0x4] ss:$12 sps:$4 sm:$0xff]   ;;  %v2331_v16 = vld [vmem:[%s3136_s4 + $0x4c] ss:$12 sps:$4 sm:$0xff]   ;;  %v2346_v18 = vld [vmem:[%s3136_s4 + $0x34] ss:$12 sps:$4 sm:$0xff]  }
   0x7   :  { %463 = vmatpush1.bf16.msra.mxu1 %v2268_v5  ;;  %1812 = vmatprep.mubr.msk.bf16.mxu1 %vm108_vm0, %v2297_v10  ;;  %v2355_v19 = vld [vmem:[%s3136_s4 + $0x30] ss:$12 sps:$4 sm:$0xff]   ;;  %v41_v21 = vld [vmem:[%s3137_s0] sm:$0xff]  ;;  %v2446_v39 = vld [vmem:[%s3136_s4 + $0x68] ss:$12 sps:$4 sm:$0xff]   ;;  %v3149_v46 = vsub.s32 2, %v2500_v45 }
   0x8   :  { %464 = vmatprep.subr.bf16.mxu1 %v2274_v6  ;;  %135 = vmatprep.subr.bf16.mxu0 %v2028_v13  ;;  %v2361_v20 = vld [vmem:[%s3136_s4 + $0x1c] ss:$12 sps:$4 sm:$0xff]   ;;  %vm802_vm1 = vcmp.gt.s32.totalorder %v41_v21, 2  ;;  %vm568_vm2 = vcmp.gt.s32.totalorder %v41_v21, 0  ;;  %vm919_vm3 = vcmp.gt.s32.totalorder %v41_v21, 3  ;;  %vm685_vm4 = vcmp.gt.s32.totalorder %v41_v21, 1 }
   0x9   :  { %136 = vmatpush1.bf16.msra.mxu0 %v2030_v14  ;;  %v2372_v22 = vld [vmem:[%s3136_s4 + $0x18] ss:$12 sps:$4 sm:$0xff]   ;;  %v803_v23 = vsel %vm802_vm1, 1, %v3145_v1  ;;  %v569_v24 = vsel %vm568_vm2, 1, %v3145_v1  ;;  %v920_v26 = vsel %vm919_vm3, 1, %v3145_v1  ;;  %v686_v27 = vsel %vm685_vm4, 1, %v3145_v1 }
   0xa   :  { %578 = vmatprep.subr.bf16.mxu0 %v2263_v4  ;;  %v2381_v25 = vld [vmem:[%s3136_s4 + $0x4] ss:$12 sps:$4 sm:$0xff]   ;;  %805 = vperm.xlu1 %2004, %v803_v23   ;;  %vm1153_vm5 = vcmp.gt.s32.totalorder %v41_v21, 5  ;;  %v2392_v28 = vld [vmem:[%s3136_s4] ss:$12 sps:$4 sm:$0xff]   ;;  %vm1036_vm6 = vcmp.gt.s32.totalorder %v41_v21, 4 }
   0xb   :  { %465 = vmatpush1.bf16.msra.mxu1 %v2281_v7  ;;  %571 = vperm.xlu0 %2003, %v569_v24   ;;  %v2397_v29 = vld [vmem:[%s3138_s2] sm:$0xff]  ;;  %v1154_v30 = vsel %vm1153_vm5, 1, %v3145_v1  ;;  %v1037_v32 = vsel %vm1036_vm6, 1, %v3145_v1  ;;  %vm1387_vm7 = vcmp.gt.s32.totalorder %v41_v21, 7  ;;  %v2410_v33 = vld [vmem:[%s3136_s4 + $0xb0] ss:$12 sps:$4 sm:$0xff]  }
   0xc   :  { %466 = vmatprep.subr.bf16.mxu1 %v2287_v8  ;;  %1648 = vmatmul.mubr.msk.bf16.vlgmr.msra.gmra.mxu0 %vm108_vm0, %v2006_v2  ;;  %v317_v31 = vpack.c.bf16 %v2397_v29, %v2397_v29  ;;  %vm1270_vm8 = vcmp.gt.s32.totalorder %v41_v21, 6  ;;  %v1388_v35 = vsel %vm1387_vm7, 1, %v3145_v1  ;;  %v2423_v37 = vld [vmem:[%s3136_s4 + $0x98] ss:$12 sps:$4 sm:$0xff]   ;;  %v2434_v38 = vld [vmem:[%s3136_s4 + $0x80] ss:$12 sps:$4 sm:$0xff]  }
   0xd   :  { %579 = vmatpush1.bf16.msra.mxu0 %v2268_v5  ;;  %163 = vmatprep.mubr.bf16.mxu0 %v3145_v1  ;;  %v1271_v36 = vsel %vm1270_vm8, 1, %v3145_v1  ;;  %v2455_v40 = vld [vmem:[%s3136_s4 + $0x50] ss:$12 sps:$4 sm:$0xff]   ;;  %v2463_v41 = vld [vmem:[%s3136_s4 + $0x38] ss:$12 sps:$4 sm:$0xff]  }
   0xe   :  { %1813 = vmatmul.mubr.msk.bf16.gmra.mxu1 %vm108_vm0, %v2303_v11  ;;  %580 = vmatprep.subr.bf16.mxu0 %v2274_v6  ;;  %v2470_v42 = vld [vmem:[%s3136_s4 + $0x20] ss:$12 sps:$4 sm:$0xff]   ;;  %v2477_v43 = vld [vmem:[%s3136_s4 + $0x8] ss:$12 sps:$4 sm:$0xff]  }
   0xf   :  { %467 = vmatpush1.bf16.msra.mxu1 %v2292_v9  ;;  %494 = vmatprep.mubr.bf16.mxu1 %v3145_v1  ;;  %v55_v47 = vld [vmem:[%s3139_s5] sm:$0x7] }
  0x10   :  { %468 = vmatprep.subr.bf16.mxu1 %v2309_v12  ;;  %922 = vperm.xlu1 %2004, %v920_v26   ;;  %v2508_v48 = vrot.slane %v55_v47, %v3149_v46 }
  0x11   :  { %581 = vmatpush1.bf16.msra.mxu0 %v2281_v7  ;;  %688 = vperm.xlu0 %2003, %v686_v27  }
  0x12   :  { %582 = vmatprep.subr.bf16.mxu0 %v2287_v8 }
  0x13   :  { %469 = vmatpush1.bf16.msra.mxu1 %v2325_v15 }
  0x14   :  { %470 = vmatprep.subr.bf16.mxu1 %v2331_v16  ;;  %1649 = vmatmul.mubr.msk.bf16.gmra.mxu0 %vm108_vm0, %v2007_v3  ;;  %v59_v3 = vsub.s32 0, %v2500_v45 }
  0x15   :  { %583 = vmatpush1.bf16.msra.mxu0 %v2292_v9  ;;  %173 = vmatprep.mubr.bf16.mxu0 %v3145_v1 }
  0x16   :  { %584 = vmatprep.subr.bf16.mxu0 %v2309_v12  ;;  %1156 = vperm.xlu1 %2004, %v1154_v30   ;;  %v2539_v14 = vrot.slane %v55_v47, %v59_v3 }
  0x17   :  { %471 = vmatpush1.bf16.msra.mxu1 %v2339_v17  ;;  %1039 = vperm.xlu0 %2003, %v1037_v32  }
  0x18   :  { %472 = vmatprep.subr.bf16.mxu1 %v2346_v18 }
  0x19   :  { %585 = vmatpush1.bf16.msra.mxu0 %v2325_v15 }
  0x1a   :  { %586 = vmatprep.subr.bf16.mxu0 %v2331_v16  ;;  %1390 = vperm.xlu1 %2004, %v1388_v35  }
  0x1b   :  { %473 = vmatpush1.bf16.msra.mxu1 %v2355_v19  ;;  %1273 = vperm.xlu0 %2003, %v1271_v36  }
  0x1c   :  { %474 = vmatprep.subr.bf16.mxu1 %v2361_v20  ;;  %1650 = vmatmul.mubr.msk.bf16.gmra.mxu0 %vm108_vm0, %v2297_v10 }
  0x1d   :  { %587 = vmatpush1.bf16.msra.mxu0 %v2339_v17  ;;  %183 = vmatprep.mubr.bf16.mxu0 %v3145_v1 }
  0x1e   :  { %588 = vmatprep.subr.bf16.mxu0 %v2346_v18 }
  0x1f   :  { %475 = vmatpush1.bf16.msra.mxu1 %v2372_v22 }
  0x20   :  { %476 = vmatprep.subr.bf16.mxu1 %v2381_v25 }
  0x21   :  { %589 = vmatpush1.bf16.msra.mxu0 %v2355_v19 }
  0x22   :  { %590 = vmatprep.subr.bf16.mxu0 %v2361_v20 }
  0x23   :  { %477 = vmatpush1.bf16.msra.mxu1 %v2392_v28 }
  0x24   :  { %1816 = vmatprep.subr.bf16.mxu1 %v3147_v34  ;;  %1651 = vmatmul.mubr.msk.bf16.gmra.mxu0 %vm108_vm0, %v2303_v11  ;;  %v63_v11 = vsub.s32 1, %v2500_v45 }
  0x25   :  { %610 = vmatprep.mubr.bf16.mxu0 %v3145_v1  ;;  %591 = vmatpush1.bf16.msra.mxu0 %v2372_v22 }
  0x26   :  { %495 = vmatmul.mubr.bf16.vlgmr.msra.gmra.mxu1 %v317_v31  ;;  %592 = vmatprep.subr.bf16.mxu0 %v2381_v25  ;;  %v2541_v23 = vrot.slane %v55_v47, %v63_v11 }
  0x27   :  { %1817 = vmatpush3.bf16.msra.mxu1 %v2410_v33  ;;  %1832 = vmatprep.mubr.msk.bf16.mxu1 %vm2191_vm9, %v3147_v34 }
  0x28   :  { %1818 = vmatprep.subr.bf16.mxu1 %v3147_v34 }
  0x29   :  { %593 = vmatpush1.bf16.msra.mxu0 %v2392_v28 }
  0x2a   :  { %695 = vmatprep.subr.bf16.mxu0 %v2263_v4 }
  0x2b   :  { %1819 = vmatpush3.bf16.msra.mxu1 %v2423_v37 }
  0x2c   :  { %1820 = vmatprep.subr.bf16.mxu1 %v3147_v34 }
  0x2f   :  { %1821 = vmatpush3.bf16.msra.mxu1 %v2434_v38 }
  0x30   :  { %1822 = vmatprep.subr.bf16.mxu1 %v3147_v34 }
  0x33   :  { %1823 = vmatpush3.bf16.msra.mxu1 %v2446_v39 }
  0x34   :  { %1824 = vmatprep.subr.bf16.mxu1 %v3147_v34 }
  0x37   :  { %1825 = vmatpush3.bf16.msra.mxu1 %v2455_v40 }
  0x38   :  { %1826 = vmatprep.subr.bf16.mxu1 %v3147_v34 }
  0x3b   :  { %1827 = vmatpush3.bf16.msra.mxu1 %v2463_v41 }
  0x3c   :  { %1828 = vmatprep.subr.bf16.mxu1 %v3147_v34 }
  0x3f   :  { %1829 = vmatpush3.bf16.msra.mxu1 %v2470_v42 }
  0x40   :  { %1830 = vmatprep.subr.bf16.mxu1 %v3147_v34 }
  0x43   :  { %1831 = vmatpush3.bf16.msra.mxu1 %v2477_v43 }
  0x44   :  { %1836 = vmatprep.subr.bf16.mxu1 %v3147_v34 }
  0x46   :  { %1833 = vmatmul.mubr.bf16.vlgmr.msra.gmra.mxu1 %v317_v31  ;;  %v315_v31 = vld [vmem:[%s3140_s6] sm:$0x7] }
  0x47   :  { %1837 = vmatpush3.bf16.msra.mxu1 %v2410_v33  ;;  %1852 = vmatprep.mubr.msk.bf16.mxu1 %vm2191_vm9, %v3147_v34  ;;  %v2558_v44 = vrot.slane %v315_v31, %v59_v3 }
  0x48   :  { %1838 = vmatprep.subr.bf16.mxu1 %v3147_v34 }
  0x4b   :  { %1839 = vmatpush3.bf16.msra.mxu1 %v2423_v37 }
  0x4c   :  { %1840 = vmatprep.subr.bf16.mxu1 %v3147_v34 }
  0x4f   :  { %1841 = vmatpush3.bf16.msra.mxu1 %v2434_v38 }
  0x50   :  { %1842 = vmatprep.subr.bf16.mxu1 %v3147_v34 }
  0x53   :  { %1843 = vmatpush3.bf16.msra.mxu1 %v2446_v39 }
  0x54   :  { %1844 = vmatprep.subr.bf16.mxu1 %v3147_v34 }
  0x57   :  { %1845 = vmatpush3.bf16.msra.mxu1 %v2455_v40 }
  0x58   :  { %1846 = vmatprep.subr.bf16.mxu1 %v3147_v34 }
  0x5b   :  { %1847 = vmatpush3.bf16.msra.mxu1 %v2463_v41 }
  0x5c   :  { %1848 = vmatprep.subr.bf16.mxu1 %v3147_v34 }
  0x5f   :  { %1849 = vmatpush3.bf16.msra.mxu1 %v2470_v42 }
  0x60   :  { %1850 = vmatprep.subr.bf16.mxu1 %v3147_v34 }
  0x63   :  { %1851 = vmatpush3.bf16.msra.mxu1 %v2477_v43 }
  0x64   :  { %1856 = vmatprep.subr.bf16.mxu1 %v3147_v34 }
  0xc6   :  { %v1810_v49 = vpop.f32.mrf.mxu1 }
  0xc7   :  { %v2511_v50 = vadd.f32 %v1810_v49, %v2508_v48 }
  0xc8   :  { %v2513_v51 = vpop.f32.mrf.mxu1 }
  0xca   :  { %v1811_v52 = vpop.f32.mrf.mxu1 }
  0xcb   :  { %v2516_v53 = vadd.f32 %v1811_v52, %v2508_v48 }
  0xcc   :  { %v231_v54 = vpop.f32.mrf.mxu1  ;;  %v155_v62 = vpop.f32.mrf.mxu0 }
  0xcd   :  { %v2519_v55 = vadd.f32 %v231_v54, %v2508_v48  ;;  %v156_v52 = vadd.f32 %v155_v62, %v2539_v14 }
  0xce   :  { %v1814_v56 = vpop.f32.mrf.mxu1  ;;  %v157_v2 = vpop.f32.mrf.mxu0 }
  0xcf   :  { %v2522_v57 = vadd.f32 %v1814_v56, %v2508_v48 }
  0xd0   :  { %v244_v58 = vpop.f32.mrf.mxu1  ;;  %v2534_v10 = vpop.f32.mrf.mxu0 }
  0xd1   :  { %3152 = vst [vmem:[#allocation4_spill] sm:$0xff] %v2522_v57  ;;  %v2525_v59 = vadd.f32 %v244_v58, %v2508_v48 }
  0xd2   :  { %v1815_v60 = vpop.f32.mrf.mxu1  ;;  %v2537_v13 = vpop.f32.mrf.mxu0 }
  0xd3   :  { %v2528_v61 = vadd.f32 %v1815_v60, %v2508_v48 }
  0xd4   :  { %v247_v63 = vpop.f32.mrf.mxu1  ;;  %v165_v21 = vpop.f32.mrf.mxu0 }
  0xd5   :  { %3153 = vst [vmem:[#allocation5_spill] sm:$0xff] %v2528_v61  ;;  %v2531_v0 = vadd.f32 %v247_v63, %v2508_v48  ;;  %v2544_v24 = vadd.f32 %v165_v21, %v2539_v14  ;;  %v2568_v63 = vrot.slane %v315_v31, %v63_v11  ;;  %v158_v11 = vadd.f32 %v157_v2, %v2541_v23 }
  0xd6   :  { %v167_v26 = vpop.f32.mrf.mxu0 }
  0xd7   :  { %v2547_v27 = vadd.f32 %v167_v26, %v2541_v23 }
  0xd8   :  { %v169_v30 = vpop.f32.mrf.mxu0 }
  0xd9   :  { %v2553_v32 = vadd.f32 %v169_v30, %v2539_v14 }
  0xda   :  { %v171_v35 = vpop.f32.mrf.mxu0 }
  0xdb   :  { %v2556_v36 = vadd.f32 %v171_v35, %v2541_v23 }
  0xdc   :  { %v175_v47 = vpop.f32.mrf.mxu0 }
  0xdd   :  { %v2561_v49 = vadd.f32 %v175_v47, %v2539_v14 }
  0xde   :  { %v177_v54 = vpop.f32.mrf.mxu0 }
  0xdf   :  { %v2565_v58 = vadd.f32 %v177_v54, %v2541_v23 }
  0xe0   :  { %v179_v21 = vpop.f32.mrf.mxu0 }
  0xe1   :  { %v2571_v3 = vadd.f32 %v179_v21, %v2539_v14 }
  0xe2   :  { %v181_v35 = vpop.f32.mrf.mxu0 }
  0xe3   :  { %v2574_v1 = vadd.f32 %v181_v35, %v2541_v23 }
  0xe4   :  { %v185_v54 = vpop.f32.mrf.mxu0 }
  0xe6   :  { %v496_v56 = vpop.f32.mrf.mxu1  ;;  %v187_v61 = vpop.f32.mrf.mxu0 }
  0xe7   :  { %v497_v60 = vadd.f32 %v496_v56, %v2558_v44  ;;  %v2578_v56 = vadd.f32 %v185_v54, %v2539_v14  ;;  %v2582_v21 = vadd.f32 %v187_v61, %v2541_v23 }
  0xe8   :  { %v498_v26 = vpop.f32.mrf.mxu1 }
  0xe9   :  { %v544_v30 = vadd.f32 %v497_v60, %v156_v52  ;;  %v499_v34 = vadd.f32 %v498_v26, %v2568_v63  ;;  %3154 = vst [vmem:[#allocation6_spill] sm:$0xff] %v2582_v21  ;;  %v189_v60 = vpop.f32.mrf.mxu0 }
  0xea   :  { %v500_v47 = vpop.f32.mrf.mxu1  ;;  %v2585_v35 = vadd.f32 %v189_v60, %v2539_v14  ;;  %v229_v60 = vadd.f32 %v2513_v51, %v2508_v48 }
  0xeb   :  { %v1680_v62 = vmul.f32 -1.442695, %v544_v30  ;;  %v552_v52 = vadd.f32 %v499_v34, %v158_v11 }
  0xec   :  { %v501_v46 = vpop.f32.mrf.mxu1  ;;  %3155 = vst [vmem:[#allocation7_spill] sm:$0xff] %v2585_v35 }
  0xed   :  { %2053 = vpow2.f32 %v1680_v62  ;;  %v1681_v30 = vmul.f32 -1.442695, %v552_v52  ;;  %v3156_v46 = vsub.s32 2, %v2500_v45 }
  0xef   :  { %2055 = vpow2.f32 %v1681_v30  ;;  %v2589_v54 = vrot.slane %v315_v31, %v3156_v46 }
  0xfa   :  { %v2054_v26 = vpop.eup %2053 }
  0xfb   :  { %v548_v47 = vadd.f32 1.0, %v2054_v26 }
  0xfc   :  { %v2056_v2 = vpop.eup %2055 }
  0xfd   :  { %2057 = vrcp.f32 %v548_v47  ;;  %v556_v57 = vadd.f32 1.0, %v2056_v2  ;;  %v2595_v2 = vpop.permute.xlu0 %571 }
  0xfe   :  { %3157 = vst [vmem:[#allocation8_spill] sm:$0xff] %v2595_v2  ;;  %vm573_vm10 = vcmp.eq.s32.totalorder %v2595_v2, 1 }
  0xff   :  { %2059 = vrcp.f32 %v556_v57  ;;  %v3159_v57 = vmov 0.0  }
 0x106   :  { %v537_v62 = vpop.f32.mrf.mxu1 }
 0x107   :  { %v538_v61 = vadd.f32 %v537_v62, %v2589_v54 }
 0x108   :  { %v1834_v21 = vpop.f32.mrf.mxu1 }
 0x10a   :  { %v2058_v34 = vpop.eup %2057  ;;  %v540_v11 = vpop.f32.mrf.mxu1 }
 0x10b   :  { %v560_v52 = vmul.f32 %v2058_v34, %v538_v61  ;;  %v160_v34 = vadd.f32 %v2534_v10, %v2539_v14 }
 0x10c   :  { %v1835_v30 = vpop.f32.mrf.mxu1  ;;  %v2060_v47 = vpop.eup %2059 }
 0x10d   :  { %v561_v26 = vadd.f32 %v560_v52, %v229_v60  ;;  %v563_v45 = vsub.f32 1.0, %v2060_v47  ;;  %v565_v35 = vmul.f32 %v2060_v47, %v2397_v29 }
 0x10f   :  { %2061 = vtanh.f32 %v561_v26 }
 0x11c   :  { %v2062_v31 = vpop.eup %2061 }
 0x11d   :  { %v564_v46 = vmul.f32 %v2062_v31, %v563_v45 }
 0x11f   :  { %v2598_v21 = vadd.f32 %v565_v35, %v564_v46  ;;  %v3160_v35 = vmov 0  }
 0x121   :  { %3158 = vst [vmem:[#allocation9_spill] sm:$0xff] %v2598_v21  ;;  %v2604_v48 = vsel %vm573_vm10, %v2598_v21, %v2397_v29  ;;  %v2643_v29 = vpop.f32.mrf.mxu0 }
 0x122   :  { %v577_v51 = vpack.c.bf16 %v2604_v48, %v2604_v48  ;;  %3161 = vst [vmem:[#allocation10_spill] sm:$0xff] %v2643_v29  ;;  %v162_v29 = vadd.f32 %v2537_v13, %v2541_v23 }
 0x124   :  { %611 = vmatmul.mubr.bf16.vlgmr.msra.gmra.mxu0 %v577_v51  ;;  %1853 = vmatmul.mubr.bf16.vlgmr.msra.gmra.mxu1 %v577_v51 }
 0x125   :  { %696 = vmatpush1.bf16.msra.mxu0 %v2268_v5  ;;  %1857 = vmatpush3.bf16.msra.mxu1 %v2410_v33 }
 0x126   :  { %697 = vmatprep.subr.bf16.mxu0 %v2274_v6  ;;  %1858 = vmatprep.subr.bf16.mxu1 %v3159_v57 }
 0x127   :  { %727 = vmatprep.mubr.bf16.mxu0 %v3160_v35  ;;  %1872 = vmatprep.mubr.msk.bf16.mxu1 %vm2191_vm9, %v3159_v57 }
 0x129   :  { %698 = vmatpush1.bf16.msra.mxu0 %v2281_v7  ;;  %1859 = vmatpush3.bf16.msra.mxu1 %v2423_v37 }
 0x12a   :  { %699 = vmatprep.subr.bf16.mxu0 %v2287_v8  ;;  %1860 = vmatprep.subr.bf16.mxu1 %v3159_v57 }
 0x12d   :  { %700 = vmatpush1.bf16.msra.mxu0 %v2292_v9  ;;  %1861 = vmatpush3.bf16.msra.mxu1 %v2434_v38 }
 0x12e   :  { %701 = vmatprep.subr.bf16.mxu0 %v2309_v12  ;;  %1862 = vmatprep.subr.bf16.mxu1 %v3159_v57 }
 0x131   :  { %702 = vmatpush1.bf16.msra.mxu0 %v2325_v15  ;;  %1863 = vmatpush3.bf16.msra.mxu1 %v2446_v39 }
 0x132   :  { %703 = vmatprep.subr.bf16.mxu0 %v2331_v16  ;;  %1864 = vmatprep.subr.bf16.mxu1 %v3159_v57 }
 0x135   :  { %704 = vmatpush1.bf16.msra.mxu0 %v2339_v17  ;;  %1865 = vmatpush3.bf16.msra.mxu1 %v2455_v40 }
 0x136   :  { %705 = vmatprep.subr.bf16.mxu0 %v2346_v18  ;;  %1866 = vmatprep.subr.bf16.mxu1 %v3159_v57 }
 0x139   :  { %706 = vmatpush1.bf16.msra.mxu0 %v2355_v19  ;;  %1867 = vmatpush3.bf16.msra.mxu1 %v2463_v41 }
 0x13a   :  { %707 = vmatprep.subr.bf16.mxu0 %v2361_v20  ;;  %1868 = vmatprep.subr.bf16.mxu1 %v3159_v57 }
 0x13d   :  { %708 = vmatpush1.bf16.msra.mxu0 %v2372_v22  ;;  %1869 = vmatpush3.bf16.msra.mxu1 %v2470_v42 }
 0x13e   :  { %709 = vmatprep.subr.bf16.mxu0 %v2381_v25  ;;  %1870 = vmatprep.subr.bf16.mxu1 %v3159_v57 }
 0x141   :  { %710 = vmatpush1.bf16.msra.mxu0 %v2392_v28  ;;  %1871 = vmatpush3.bf16.msra.mxu1 %v2477_v43 }
 0x142   :  { %812 = vmatprep.subr.bf16.mxu0 %v2263_v4  ;;  %1876 = vmatprep.subr.bf16.mxu1 %v3159_v57 }
 0x1e4   :  { %v612_v62 = vpop.f32.mrf.mxu0  ;;  %v653_v61 = vpop.f32.mrf.mxu1 }
 0x1e5   :  { %v613_v11 = vadd.f32 %v612_v62, %v2558_v44 }
 0x1e6   :  { %v614_v60 = vpop.f32.mrf.mxu0  ;;  %v1854_v52 = vpop.f32.mrf.mxu1 }
 0x1e7   :  { %v660_v30 = vadd.f32 %v613_v11, %v160_v34  ;;  %v615_v31 = vadd.f32 %v614_v60, %v2568_v63  ;;  %v654_v34 = vadd.f32 %v653_v61, %v2589_v54 }
 0x1e8   :  { %v616_v26 = vpop.f32.mrf.mxu0  ;;  %v656_v47 = vpop.f32.mrf.mxu1 }
 0x1e9   :  { %v1682_v45 = vmul.f32 -1.442695, %v660_v30  ;;  %v668_v2 = vadd.f32 %v615_v31, %v162_v29 }
 0x1ea   :  { %v617_v46 = vpop.f32.mrf.mxu0  ;;  %v1855_v51 = vpop.f32.mrf.mxu1 }
 0x1eb   :  { %2063 = vpow2.f32 %v1682_v45  ;;  %v1683_v21 = vmul.f32 -1.442695, %v668_v2 }
 0x1ed   :  { %2065 = vpow2.f32 %v1683_v21  ;;  %v2654_v21 = vpop.permute.xlu0 %688 }
 0x1ee   :  { %vm690_vm11 = vcmp.eq.s32.totalorder %v2654_v21, 1  ;;  %v2049_v21 = vld [vmem:[%s3141_s7 + $0x18] sm:$0xff]  }
 0x1ef   :  { %vm1705_vm1 = vmpackc.low %vm690_vm11, %vm573_vm10 }
 0x1f8   :  { %v2064_v10 = vpop.eup %2063 }
 0x1f9   :  { %v664_v14 = vadd.f32 1.0, %v2064_v10 }
 0x1fa   :  { %v2066_v62 = vpop.eup %2065 }
 0x1fb   :  { %2067 = vrcp.f32 %v664_v14  ;;  %v672_v52 = vadd.f32 1.0, %v2066_v62 }
 0x1fd   :  { %2069 = vrcp.f32 %v672_v52 }
 0x208   :  { %v2068_v11 = vpop.eup %2067 }
 0x209   :  { %v676_v30 = vmul.f32 %v2068_v11, %v654_v34 }
 0x20a   :  { %v2070_v26 = vpop.eup %2069 }
 0x20b   :  { %v677_v60 = vadd.f32 %v676_v30, %v2519_v55  ;;  %v679_v47 = vsub.f32 1.0, %v2070_v26  ;;  %v681_v2 = vmul.f32 %v2070_v26, %v2604_v48 }
 0x20d   :  { %2071 = vtanh.f32 %v677_v60 }
 0x21a   :  { %v2072_v13 = vpop.eup %2071 }
 0x21b   :  { %v680_v45 = vmul.f32 %v2072_v13, %v679_v47 }
 0x21d   :  { %v2656_v29 = vadd.f32 %v681_v2, %v680_v45 }
 0x21f   :  { %v2663_v61 = vsel %vm690_vm11, %v2656_v29, %v2604_v48 }
 0x220   :  { %v694_v55 = vpack.c.bf16 %v2663_v61, %v2663_v61 }
 0x222   :  { %728 = vmatmul.mubr.bf16.vlgmr.msra.gmra.mxu0 %v694_v55  ;;  %1873 = vmatmul.mubr.bf16.vlgmr.msra.gmra.mxu1 %v694_v55 }
 0x223   :  { %813 = vmatpush1.bf16.msra.mxu0 %v2268_v5  ;;  %1877 = vmatpush3.bf16.msra.mxu1 %v2410_v33 }
 0x224   :  { %814 = vmatprep.subr.bf16.mxu0 %v2274_v6  ;;  %1878 = vmatprep.subr.bf16.mxu1 %v3159_v57 }
 0x225   :  { %844 = vmatprep.mubr.bf16.mxu0 %v3160_v35  ;;  %1892 = vmatprep.mubr.msk.bf16.mxu1 %vm2191_vm9, %v3159_v57 }
 0x227   :  { %815 = vmatpush1.bf16.msra.mxu0 %v2281_v7  ;;  %1879 = vmatpush3.bf16.msra.mxu1 %v2423_v37 }
 0x228   :  { %816 = vmatprep.subr.bf16.mxu0 %v2287_v8  ;;  %1880 = vmatprep.subr.bf16.mxu1 %v3159_v57 }
 0x22b   :  { %817 = vmatpush1.bf16.msra.mxu0 %v2292_v9  ;;  %1881 = vmatpush3.bf16.msra.mxu1 %v2434_v38 }
 0x22c   :  { %818 = vmatprep.subr.bf16.mxu0 %v2309_v12  ;;  %1882 = vmatprep.subr.bf16.mxu1 %v3159_v57 }
 0x22f   :  { %819 = vmatpush1.bf16.msra.mxu0 %v2325_v15  ;;  %1883 = vmatpush3.bf16.msra.mxu1 %v2446_v39 }
 0x230   :  { %820 = vmatprep.subr.bf16.mxu0 %v2331_v16  ;;  %1884 = vmatprep.subr.bf16.mxu1 %v3159_v57 }
 0x233   :  { %821 = vmatpush1.bf16.msra.mxu0 %v2339_v17  ;;  %1885 = vmatpush3.bf16.msra.mxu1 %v2455_v40 }
 0x234   :  { %822 = vmatprep.subr.bf16.mxu0 %v2346_v18  ;;  %1886 = vmatprep.subr.bf16.mxu1 %v3159_v57 }
 0x237   :  { %823 = vmatpush1.bf16.msra.mxu0 %v2355_v19  ;;  %1887 = vmatpush3.bf16.msra.mxu1 %v2463_v41 }
 0x238   :  { %824 = vmatprep.subr.bf16.mxu0 %v2361_v20  ;;  %1888 = vmatprep.subr.bf16.mxu1 %v3159_v57 }
 0x23b   :  { %825 = vmatpush1.bf16.msra.mxu0 %v2372_v22  ;;  %1889 = vmatpush3.bf16.msra.mxu1 %v2470_v42 }
 0x23c   :  { %826 = vmatprep.subr.bf16.mxu0 %v2381_v25  ;;  %1890 = vmatprep.subr.bf16.mxu1 %v3159_v57 }
 0x23f   :  { %827 = vmatpush1.bf16.msra.mxu0 %v2392_v28  ;;  %1891 = vmatpush3.bf16.msra.mxu1 %v2477_v43 }
 0x240   :  { %929 = vmatprep.subr.bf16.mxu0 %v2263_v4  ;;  %1896 = vmatprep.subr.bf16.mxu1 %v3159_v57 }
 0x2e2   :  { %v729_v48 = vpop.f32.mrf.mxu0  ;;  %v770_v31 = vpop.f32.mrf.mxu1 }
 0x2e3   :  { %v730_v46 = vadd.f32 %v729_v48, %v2558_v44  ;;  %v771_v48 = vadd.f32 %v770_v31, %v2589_v54 }
 0x2e4   :  { %v731_v51 = vpop.f32.mrf.mxu0  ;;  %v1874_v10 = vpop.f32.mrf.mxu1 }
 0x2e5   :  { %v777_v14 = vadd.f32 %v730_v46, %v2544_v24  ;;  %v732_v11 = vadd.f32 %v731_v51, %v2568_v63 }
 0x2e6   :  { %v733_v62 = vpop.f32.mrf.mxu0  ;;  %v773_v52 = vpop.f32.mrf.mxu1 }
 0x2e7   :  { %v1684_v34 = vmul.f32 -1.442695, %v777_v14  ;;  %v785_v26 = vadd.f32 %v732_v11, %v2547_v27  ;;  %v2708_v52 = vpop.permute.xlu1 %805 }
 0x2e8   :  { %v734_v30 = vpop.f32.mrf.mxu0  ;;  %v1875_v60 = vpop.f32.mrf.mxu1  ;;  %vm807_vm12 = vcmp.eq.s32.totalorder %v2708_v52, 1  ;;  %v3166_v52 = vld [vmem:[#allocation7_spill] sm:$0xff] }
 0x2e9   :  { %2073 = vpow2.f32 %v1684_v34  ;;  %v1685_v47 = vmul.f32 -1.442695, %v785_v26 }
 0x2eb   :  { %2075 = vpow2.f32 %v1685_v47 }
 0x2f6   :  { %v2074_v13 = vpop.eup %2073 }
 0x2f7   :  { %v781_v45 = vadd.f32 1.0, %v2074_v13 }
 0x2f8   :  { %v2076_v2 = vpop.eup %2075 }
 0x2f9   :  { %2077 = vrcp.f32 %v781_v45  ;;  %v789_v55 = vadd.f32 1.0, %v2076_v2 }
 0x2fb   :  { %2079 = vrcp.f32 %v789_v55 }
 0x306   :  { %v2078_v24 = vpop.eup %2077 }
 0x307   :  { %v793_v46 = vmul.f32 %v2078_v24, %v771_v48 }
 0x308   :  { %v2080_v51 = vpop.eup %2079 }
 0x309   :  { %v794_v10 = vadd.f32 %v793_v46, %v2511_v50  ;;  %v796_v14 = vsub.f32 1.0, %v2080_v51  ;;  %v798_v34 = vmul.f32 %v2080_v51, %v2663_v61 }
 0x30b   :  { %2081 = vtanh.f32 %v794_v10 }
 0x318   :  { %v2082_v62 = vpop.eup %2081 }
 0x319   :  { %v797_v27 = vmul.f32 %v2082_v62, %v796_v14 }
 0x31b   :  { %v2712_v11 = vadd.f32 %v798_v34, %v797_v27 }
 0x31d   :  { %v2718_v31 = vsel %vm807_vm12, %v2712_v11, %v2663_v61 }
 0x31e   :  { %v811_v50 = vpack.c.bf16 %v2718_v31, %v2718_v31 }
 0x320   :  { %845 = vmatmul.mubr.bf16.vlgmr.msra.gmra.mxu0 %v811_v50  ;;  %1893 = vmatmul.mubr.bf16.vlgmr.msra.gmra.mxu1 %v811_v50 }
 0x321   :  { %930 = vmatpush1.bf16.msra.mxu0 %v2268_v5  ;;  %1897 = vmatpush3.bf16.msra.mxu1 %v2410_v33 }
 0x322   :  { %931 = vmatprep.subr.bf16.mxu0 %v2274_v6  ;;  %1898 = vmatprep.subr.bf16.mxu1 %v3159_v57 }
 0x323   :  { %961 = vmatprep.mubr.bf16.mxu0 %v3160_v35  ;;  %1912 = vmatprep.mubr.msk.bf16.mxu1 %vm2191_vm9, %v3159_v57 }
 0x325   :  { %932 = vmatpush1.bf16.msra.mxu0 %v2281_v7  ;;  %1899 = vmatpush3.bf16.msra.mxu1 %v2423_v37 }
 0x326   :  { %933 = vmatprep.subr.bf16.mxu0 %v2287_v8  ;;  %1900 = vmatprep.subr.bf16.mxu1 %v3159_v57 }
 0x329   :  { %934 = vmatpush1.bf16.msra.mxu0 %v2292_v9  ;;  %1901 = vmatpush3.bf16.msra.mxu1 %v2434_v38 }
 0x32a   :  { %935 = vmatprep.subr.bf16.mxu0 %v2309_v12  ;;  %1902 = vmatprep.subr.bf16.mxu1 %v3159_v57 }
 0x32d   :  { %936 = vmatpush1.bf16.msra.mxu0 %v2325_v15  ;;  %1903 = vmatpush3.bf16.msra.mxu1 %v2446_v39 }
 0x32e   :  { %937 = vmatprep.subr.bf16.mxu0 %v2331_v16  ;;  %1904 = vmatprep.subr.bf16.mxu1 %v3159_v57 }
 0x331   :  { %938 = vmatpush1.bf16.msra.mxu0 %v2339_v17  ;;  %1905 = vmatpush3.bf16.msra.mxu1 %v2455_v40 }
 0x332   :  { %939 = vmatprep.subr.bf16.mxu0 %v2346_v18  ;;  %1906 = vmatprep.subr.bf16.mxu1 %v3159_v57 }
 0x335   :  { %940 = vmatpush1.bf16.msra.mxu0 %v2355_v19  ;;  %1907 = vmatpush3.bf16.msra.mxu1 %v2463_v41 }
 0x336   :  { %941 = vmatprep.subr.bf16.mxu0 %v2361_v20  ;;  %1908 = vmatprep.subr.bf16.mxu1 %v3159_v57 }
 0x339   :  { %942 = vmatpush1.bf16.msra.mxu0 %v2372_v22  ;;  %1909 = vmatpush3.bf16.msra.mxu1 %v2470_v42 }
 0x33a   :  { %943 = vmatprep.subr.bf16.mxu0 %v2381_v25  ;;  %1910 = vmatprep.subr.bf16.mxu1 %v3159_v57 }
 0x33d   :  { %944 = vmatpush1.bf16.msra.mxu0 %v2392_v28  ;;  %1911 = vmatpush3.bf16.msra.mxu1 %v2477_v43 }
 0x33e   :  { %1046 = vmatprep.subr.bf16.mxu0 %v2263_v4  ;;  %1916 = vmatprep.subr.bf16.mxu1 %v3159_v57 }
 0x3e0   :  { %v846_v61 = vpop.f32.mrf.mxu0  ;;  %v887_v30 = vpop.f32.mrf.mxu1 }
 0x3e1   :  { %v847_v60 = vadd.f32 %v846_v61, %v2558_v44  ;;  %v888_v34 = vadd.f32 %v887_v30, %v2589_v54 }
 0x3e2   :  { %v848_v26 = vpop.f32.mrf.mxu0  ;;  %v1894_v47 = vpop.f32.mrf.mxu1 }
 0x3e3   :  { %v894_v13 = vadd.f32 %v847_v60, %v2553_v32  ;;  %v849_v48 = vadd.f32 %v848_v26, %v2568_v63 }
 0x3e4   :  { %v850_v45 = vpop.f32.mrf.mxu0  ;;  %v890_v2 = vpop.f32.mrf.mxu1 }
 0x3e5   :  { %v1686_v55 = vmul.f32 -1.442695, %v894_v13  ;;  %v902_v4 = vadd.f32 %v849_v48, %v2556_v36  ;;  %v2764_v45 = vpop.permute.xlu1 %922 }
 0x3e6   :  { %v851_v24 = vpop.f32.mrf.mxu0  ;;  %v1895_v46 = vpop.f32.mrf.mxu1  ;;  %vm924_vm13 = vcmp.eq.s32.totalorder %v2764_v45, 1 }
 0x3e7   :  { %2083 = vpow2.f32 %v1686_v55  ;;  %v1687_v10 = vmul.f32 -1.442695, %v902_v4  ;;  %vm1708_vm2 = vmpackc.low %vm924_vm13, %vm807_vm12 }
 0x3e9   :  { %2085 = vpow2.f32 %v1687_v10 }
 0x3f4   :  { %v2084_v51 = vpop.eup %2083 }
 0x3f5   :  { %v898_v14 = vadd.f32 1.0, %v2084_v51 }
 0x3f6   :  { %v2086_v62 = vpop.eup %2085 }
 0x3f7   :  { %2087 = vrcp.f32 %v898_v14  ;;  %v906_v27 = vadd.f32 1.0, %v2086_v62 }
 0x3f9   :  { %2089 = vrcp.f32 %v906_v27 }
 0x404   :  { %v2088_v32 = vpop.eup %2087 }
 0x405   :  { %v910_v50 = vmul.f32 %v2088_v32, %v888_v34 }
 0x406   :  { %v2090_v60 = vpop.eup %2089 }
 0x407   :  { %v911_v61 = vadd.f32 %v910_v50, %v2516_v53  ;;  %v913_v26 = vsub.f32 1.0, %v2090_v60  ;;  %v915_v36 = vmul.f32 %v2090_v60, %v2718_v31  ;;  %v2824_v50 = vpop.permute.xlu0 %1039 }
 0x408   :  { %vm1041_vm14 = vcmp.eq.s32.totalorder %v2824_v50, 1 }
 0x409   :  { %2091 = vtanh.f32 %v911_v61 }
 0x416   :  { %v2092_v47 = vpop.eup %2091 }
 0x417   :  { %v914_v13 = vmul.f32 %v2092_v47, %v913_v26  ;;  %v2840_v26 = vld [vmem:[%s3136_s4 + $0xa8] ss:$12 sps:$4 sm:$0xff]  }
 0x418   :  { %v2847_v47 = vld [vmem:[%s3136_s4 + $0x94] ss:$12 sps:$4 sm:$0xff]  }
 0x419   :  { %v2766_v2 = vadd.f32 %v915_v36, %v914_v13  ;;  %v2857_v13 = vld [vmem:[%s3136_s4 + $0x90] ss:$12 sps:$4 sm:$0xff]   ;;  %v2871_v36 = vld [vmem:[%s3136_s4 + $0x78] ss:$12 sps:$4 sm:$0xff]  }
 0x41b   :  { %v2773_v30 = vsel %vm924_vm13, %v2766_v2, %v2718_v31 }
 0x41c   :  { %v928_v53 = vpack.c.bf16 %v2773_v30, %v2773_v30 }
 0x41e   :  { %962 = vmatmul.mubr.bf16.vlgmr.msra.gmra.mxu0 %v928_v53  ;;  %1913 = vmatmul.mubr.bf16.vlgmr.msra.gmra.mxu1 %v928_v53  ;;  %v2899_v53 = vld [vmem:[%s3136_s4 + $0x48] ss:$12 sps:$4 sm:$0xff]  }
 0x41f   :  { %1047 = vmatpush1.bf16.msra.mxu0 %v2268_v5  ;;  %1917 = vmatpush3.bf16.msra.mxu1 %v2410_v33  ;;  %v2813_v5 = vld [vmem:[%s3136_s4 + $0xac] ss:$12 sps:$4 sm:$0xff]  }
 0x420   :  { %1048 = vmatprep.subr.bf16.mxu0 %v2274_v6  ;;  %1918 = vmatprep.subr.bf16.mxu1 %v3159_v57 }
 0x421   :  { %1078 = vmatprep.mubr.bf16.mxu0 %v3160_v35  ;;  %1932 = vmatprep.mubr.msk.bf16.mxu1 %vm2191_vm9, %v3159_v57 }
 0x423   :  { %1049 = vmatpush1.bf16.msra.mxu0 %v2281_v7  ;;  %1919 = vmatpush3.bf16.msra.mxu1 %v2423_v37 }
 0x424   :  { %1050 = vmatprep.subr.bf16.mxu0 %v2287_v8  ;;  %1920 = vmatprep.subr.bf16.mxu1 %v3159_v57 }
 0x427   :  { %1051 = vmatpush1.bf16.msra.mxu0 %v2292_v9  ;;  %1921 = vmatpush3.bf16.msra.mxu1 %v2434_v38 }
 0x428   :  { %1052 = vmatprep.subr.bf16.mxu0 %v2309_v12  ;;  %1922 = vmatprep.subr.bf16.mxu1 %v3159_v57 }
 0x42b   :  { %1053 = vmatpush1.bf16.msra.mxu0 %v2325_v15  ;;  %1923 = vmatpush3.bf16.msra.mxu1 %v2446_v39 }
 0x42c   :  { %1054 = vmatprep.subr.bf16.mxu0 %v2331_v16  ;;  %1924 = vmatprep.subr.bf16.mxu1 %v3159_v57 }
 0x42f   :  { %1055 = vmatpush1.bf16.msra.mxu0 %v2339_v17  ;;  %1925 = vmatpush3.bf16.msra.mxu1 %v2455_v40 }
 0x430   :  { %1056 = vmatprep.subr.bf16.mxu0 %v2346_v18  ;;  %1926 = vmatprep.subr.bf16.mxu1 %v3159_v57 }
 0x433   :  { %1057 = vmatpush1.bf16.msra.mxu0 %v2355_v19  ;;  %1927 = vmatpush3.bf16.msra.mxu1 %v2463_v41 }
 0x434   :  { %1058 = vmatprep.subr.bf16.mxu0 %v2361_v20  ;;  %1928 = vmatprep.subr.bf16.mxu1 %v3159_v57 }
 0x437   :  { %1059 = vmatpush1.bf16.msra.mxu0 %v2372_v22  ;;  %1929 = vmatpush3.bf16.msra.mxu1 %v2470_v42 }
 0x438   :  { %1060 = vmatprep.subr.bf16.mxu0 %v2381_v25  ;;  %1930 = vmatprep.subr.bf16.mxu1 %v3159_v57 }
 0x43b   :  { %1061 = vmatpush1.bf16.msra.mxu0 %v2392_v28  ;;  %1931 = vmatpush3.bf16.msra.mxu1 %v2477_v43 }
 0x43c   :  { %1163 = vmatprep.subr.bf16.mxu0 %v2813_v5  ;;  %1936 = vmatprep.subr.bf16.mxu1 %v3159_v57 }
 0x4de   :  { %v963_v6 = vpop.f32.mrf.mxu0  ;;  %v1004_v7 = vpop.f32.mrf.mxu1 }
 0x4df   :  { %v964_v8 = vadd.f32 %v963_v6, %v2558_v44  ;;  %v1005_v10 = vadd.f32 %v1004_v7, %v2589_v54  ;;  %v2913_v6 = vld [vmem:[%s3136_s4 + $0x30] ss:$12 sps:$4 sm:$0xff]   ;;  %v2927_v7 = vld [vmem:[%s3136_s4 + $0x18] ss:$12 sps:$4 sm:$0xff]  }
 0x4e0   :  { %v965_v9 = vpop.f32.mrf.mxu0  ;;  %v1914_v12 = vpop.f32.mrf.mxu1 }
 0x4e1   :  { %v1011_v15 = vadd.f32 %v964_v8, %v2561_v49  ;;  %v966_v19 = vadd.f32 %v965_v9, %v2568_v63 }
 0x4e2   :  { %v967_v16 = vpop.f32.mrf.mxu0  ;;  %v1007_v17 = vpop.f32.mrf.mxu1 }
 0x4e3   :  { %v1688_v18 = vmul.f32 -1.442695, %v1011_v15  ;;  %v1019_v31 = vadd.f32 %v966_v19, %v2565_v58 }
 0x4e4   :  { %v968_v20 = vpop.f32.mrf.mxu0  ;;  %v1915_v22 = vpop.f32.mrf.mxu1 }
 0x4e5   :  { %2093 = vpow2.f32 %v1688_v18  ;;  %v1689_v55 = vmul.f32 -1.442695, %v1019_v31 }
 0x4e7   :  { %2095 = vpow2.f32 %v1689_v55 }
 0x4f2   :  { %v2094_v48 = vpop.eup %2093 }
 0x4f3   :  { %v1015_v24 = vadd.f32 1.0, %v2094_v48 }
 0x4f4   :  { %v2096_v46 = vpop.eup %2095 }
 0x4f5   :  { %2097 = vrcp.f32 %v1015_v24  ;;  %v1023_v4 = vadd.f32 1.0, %v2096_v46 }
 0x4f7   :  { %2099 = vrcp.f32 %v1023_v4 }
 0x502   :  { %v2098_v49 = vpop.eup %2097 }
 0x503   :  { %v1027_v51 = vmul.f32 %v2098_v49, %v1005_v10 }
 0x504   :  { %v2100_v62 = vpop.eup %2099 }
 0x505   :  { %v1028_v14 = vadd.f32 %v1027_v51, %v2525_v59  ;;  %v1030_v27 = vsub.f32 1.0, %v2100_v62  ;;  %v1032_v58 = vmul.f32 %v2100_v62, %v2773_v30 }
 0x507   :  { %2101 = vtanh.f32 %v1028_v14  ;;  %v2944_v14 = vpop.permute.xlu1 %1156 }
 0x508   :  { %vm1158_vm15 = vcmp.eq.s32.totalorder %v2944_v14, 1  ;;  %v3167_v14 = vld [vmem:[#allocation10_spill] sm:$0xff] }
 0x509   :  { %vm1711_vm3 = vmpackc.low %vm1158_vm15, %vm1041_vm14 }
 0x514   :  { %v2102_v34 = vpop.eup %2101 }
 0x515   :  { %v1031_v32 = vmul.f32 %v2102_v34, %v1030_v27  ;;  %v2179_v34 = vld [vmem:[%s3136_s4 + $0xb0] ss:$12 sps:$4 sm:$0xff]  }
 0x517   :  { %v2826_v61 = vadd.f32 %v1032_v58, %v1031_v32  ;;  %v2180_v32 = vld [vmem:[%s3136_s4 + $0x98] ss:$12 sps:$4 sm:$0xff]   ;;  %v2182_v58 = vld [vmem:[%s3136_s4 + $0x68] ss:$12 sps:$4 sm:$0xff]  }
 0x519   :  { %v2833_v60 = vsel %vm1041_vm14, %v2826_v61, %v2773_v30  ;;  %v2885_v30 = vld [vmem:[%s3136_s4 + $0x60] ss:$12 sps:$4 sm:$0xff]  }
 0x51a   :  { %v1045_v59 = vpack.c.bf16 %v2833_v60, %v2833_v60 }
 0x51c   :  { %1079 = vmatmul.mubr.bf16.vlgmr.msra.gmra.mxu0 %v1045_v59  ;;  %1933 = vmatmul.mubr.bf16.vlgmr.msra.gmra.mxu1 %v1045_v59  ;;  %v2184_v59 = vld [vmem:[%s3136_s4 + $0x38] ss:$12 sps:$4 sm:$0xff]  }
 0x51d   :  { %1164 = vmatpush1.bf16.msra.mxu0 %v2840_v26  ;;  %1937 = vmatpush3.bf16.msra.mxu1 %v2410_v33  ;;  %v2864_v33 = vld [vmem:[%s3136_s4 + $0x7c] ss:$12 sps:$4 sm:$0xff]  }
 0x51e   :  { %1165 = vmatprep.subr.bf16.mxu0 %v2847_v47  ;;  %1938 = vmatprep.subr.bf16.mxu1 %v3159_v57 }
 0x51f   :  { %1195 = vmatprep.mubr.bf16.mxu0 %v3160_v35  ;;  %1952 = vmatprep.mubr.msk.bf16.mxu1 %vm2191_vm9, %v3159_v57 }
 0x521   :  { %1166 = vmatpush1.bf16.msra.mxu0 %v2857_v13  ;;  %1939 = vmatpush3.bf16.msra.mxu1 %v2423_v37  ;;  %v2878_v37 = vld [vmem:[%s3136_s4 + $0x64] ss:$12 sps:$4 sm:$0xff]  }
 0x522   :  { %1167 = vmatprep.subr.bf16.mxu0 %v2864_v33  ;;  %1940 = vmatprep.subr.bf16.mxu1 %v3159_v57 }
 0x525   :  { %1168 = vmatpush1.bf16.msra.mxu0 %v2871_v36  ;;  %1941 = vmatpush3.bf16.msra.mxu1 %v2434_v38  ;;  %v2892_v38 = vld [vmem:[%s3136_s4 + $0x4c] ss:$12 sps:$4 sm:$0xff]  }
 0x526   :  { %1169 = vmatprep.subr.bf16.mxu0 %v2878_v37  ;;  %1942 = vmatprep.subr.bf16.mxu1 %v3159_v57 }
 0x529   :  { %1170 = vmatpush1.bf16.msra.mxu0 %v2885_v30  ;;  %1943 = vmatpush3.bf16.msra.mxu1 %v2446_v39  ;;  %v2906_v39 = vld [vmem:[%s3136_s4 + $0x34] ss:$12 sps:$4 sm:$0xff]  }
 0x52a   :  { %1171 = vmatprep.subr.bf16.mxu0 %v2892_v38  ;;  %1944 = vmatprep.subr.bf16.mxu1 %v3159_v57 }
 0x52d   :  { %1172 = vmatpush1.bf16.msra.mxu0 %v2899_v53  ;;  %1945 = vmatpush3.bf16.msra.mxu1 %v2455_v40  ;;  %v2920_v40 = vld [vmem:[%s3136_s4 + $0x1c] ss:$12 sps:$4 sm:$0xff]  }
 0x52e   :  { %1173 = vmatprep.subr.bf16.mxu0 %v2906_v39  ;;  %1946 = vmatprep.subr.bf16.mxu1 %v3159_v57 }
 0x531   :  { %1174 = vmatpush1.bf16.msra.mxu0 %v2913_v6  ;;  %1947 = vmatpush3.bf16.msra.mxu1 %v2463_v41 }
 0x532   :  { %1175 = vmatprep.subr.bf16.mxu0 %v2920_v40  ;;  %1948 = vmatprep.subr.bf16.mxu1 %v3159_v57 }
 0x535   :  { %1176 = vmatpush1.bf16.msra.mxu0 %v2927_v7  ;;  %1949 = vmatpush3.bf16.msra.mxu1 %v2470_v42 }
 0x536   :  { %1177 = vmatprep.subr.bf16.mxu0 %v2381_v25  ;;  %1950 = vmatprep.subr.bf16.mxu1 %v3159_v57 }
 0x539   :  { %1178 = vmatpush1.bf16.msra.mxu0 %v2392_v28  ;;  %1951 = vmatpush3.bf16.msra.mxu1 %v2477_v43 }
 0x53a   :  { %1280 = vmatprep.subr.bf16.mxu0 %v2813_v5  ;;  %1956 = vmatprep.subr.bf16.mxu1 %v3159_v57 }
 0x5dc   :  { %v1080_v41 = vpop.f32.mrf.mxu0  ;;  %v1121_v8 = vpop.f32.mrf.mxu1 }
 0x5dd   :  { %v1081_v9 = vadd.f32 %v1080_v41, %v2558_v44  ;;  %v1122_v48 = vadd.f32 %v1121_v8, %v2589_v54 }
 0x5de   :  { %v1082_v12 = vpop.f32.mrf.mxu0  ;;  %v1934_v15 = vpop.f32.mrf.mxu1 }
 0x5df   :  { %v1128_v42 = vadd.f32 %v1081_v9, %v2571_v3  ;;  %v1083_v18 = vadd.f32 %v1082_v12, %v2568_v63  ;;  %v3162_v12 = vld [vmem:[#allocation6_spill] sm:$0xff] }
 0x5e0   :  { %v1084_v16 = vpop.f32.mrf.mxu0  ;;  %v1124_v25 = vpop.f32.mrf.mxu1 }
 0x5e1   :  { %v1690_v17 = vmul.f32 -1.442695, %v1128_v42  ;;  %v1136_v43 = vadd.f32 %v1083_v18, %v2574_v1 }
 0x5e2   :  { %v1085_v28 = vpop.f32.mrf.mxu0  ;;  %v1935_v19 = vpop.f32.mrf.mxu1 }
 0x5e3   :  { %2103 = vpow2.f32 %v1690_v17  ;;  %v1691_v5 = vmul.f32 -1.442695, %v1136_v43  ;;  %v3163_v43 = vld [vmem:[#allocation4_spill] sm:$0xff] }
 0x5e5   :  { %2105 = vpow2.f32 %v1691_v5 }
 0x5f0   :  { %v2104_v20 = vpop.eup %2103 }
 0x5f1   :  { %v1132_v22 = vadd.f32 1.0, %v2104_v20 }
 0x5f2   :  { %v2106_v31 = vpop.eup %2105 }
 0x5f3   :  { %2107 = vrcp.f32 %v1132_v22  ;;  %v1140_v55 = vadd.f32 1.0, %v2106_v31 }
 0x5f5   :  { %2109 = vrcp.f32 %v1140_v55  ;;  %v3019_v55 = vpop.permute.xlu0 %1273 }
 0x5f6   :  { %vm1275_vm0 = vcmp.eq.s32.totalorder %v3019_v55, 1 }
 0x600   :  { %v2108_v3 = vpop.eup %2107 }
 0x601   :  { %v1144_v24 = vmul.f32 %v2108_v3, %v1122_v48 }
 0x602   :  { %v2110_v4 = vpop.eup %2109 }
 0x603   :  { %v1145_v46 = vadd.f32 %v1144_v24, %v2531_v0  ;;  %v1147_v10 = vsub.f32 1.0, %v2110_v4  ;;  %v1149_v1 = vmul.f32 %v2110_v4, %v2833_v60 }
 0x605   :  { %2111 = vtanh.f32 %v1145_v46 }
 0x612   :  { %v2112_v49 = vpop.eup %2111 }
 0x613   :  { %v1148_v51 = vmul.f32 %v2112_v49, %v1147_v10  ;;  %v2046_v10 = vld [vmem:[%s3141_s7 + $0x30] sm:$0xff]   ;;  %v3164_v49 = vld [vmem:[#allocation9_spill] sm:$0xff] }
 0x615   :  { %v2946_v62 = vadd.f32 %v1149_v1, %v1148_v51  ;;  %v1706_v51 = vpack.c.bf16 %v2656_v29, %v3164_v49  ;;  %v2048_v29 = vld [vmem:[%s3141_s7 + $0x20] sm:$0xff]  }
 0x617   :  { %v2953_v27 = vsel %vm1158_vm15, %v2946_v62, %v2833_v60  ;;  %v2183_v60 = vld [vmem:[%s3136_s4 + $0x50] ss:$12 sps:$4 sm:$0xff]  }
 0x618   :  { %v1162_v0 = vpack.c.bf16 %v2953_v27, %v2953_v27 }
 0x61a   :  { %1196 = vmatmul.mubr.bf16.vlgmr.msra.gmra.mxu0 %v1162_v0  ;;  %1953 = vmatmul.mubr.bf16.vlgmr.msra.gmra.mxu1 %v1162_v0  ;;  %v2050_v0 = vld [vmem:[%s3141_s7 + $0x10] sm:$0xff]  }
 0x61b   :  { %1281 = vmatpush1.bf16.msra.mxu0 %v2840_v26  ;;  %1957 = vmatpush3.bf16.msra.mxu1 %v2179_v34  ;;  %v2185_v26 = vld [vmem:[%s3136_s4 + $0x20] ss:$12 sps:$4 sm:$0xff]  }
 0x61c   :  { %1282 = vmatprep.subr.bf16.mxu0 %v2847_v47  ;;  %1958 = vmatprep.subr.bf16.mxu1 %v3159_v57  ;;  %v2186_v47 = vld [vmem:[%s3136_s4 + $0x4] ss:$12 sps:$4 sm:$0xff]   ;;  %v2051_v34 = vld [vmem:[%s3141_s7 + $0x8] sm:$0xff]  }
 0x61d   :  { %1312 = vmatprep.mubr.bf16.mxu0 %v3160_v35  ;;  %1972 = vmatprep.mubr.msk.bf16.mxu1 %vm2191_vm9, %v3159_v57  ;;  %v2181_v35 = vld [vmem:[%s3136_s4 + $0x80] ss:$12 sps:$4 sm:$0xff]  }
 0x61f   :  { %1283 = vmatpush1.bf16.msra.mxu0 %v2857_v13  ;;  %1959 = vmatpush3.bf16.msra.mxu1 %v2180_v32  ;;  %v2187_v13 = vld [vmem:[%s3136_s4] ss:$12 sps:$4 sm:$0xff]  }
 0x620   :  { %1284 = vmatprep.subr.bf16.mxu0 %v2864_v33  ;;  %1960 = vmatprep.subr.bf16.mxu1 %v3159_v57  ;;  %v2188_v33 = vld [vmem:[%s3136_s4 + $0x8] ss:$12 sps:$4 sm:$0xff]   ;;  %v2052_v32 = vld [vmem:[%s3141_s7] sm:$0xff]  }
 0x623   :  { %1285 = vmatpush1.bf16.msra.mxu0 %v2871_v36  ;;  %1961 = vmatpush3.bf16.msra.mxu1 %v2181_v35  ;;  %v2045_v36 = vld [vmem:[%s3141_s7 + $0x38] sm:$0xff]   ;;  %v1709_v35 = vpack.c.bf16 %v2766_v2, %v2712_v11 }
 0x624   :  { %1286 = vmatprep.subr.bf16.mxu0 %v2878_v37  ;;  %1962 = vmatprep.subr.bf16.mxu1 %v3159_v57 }
 0x627   :  { %1287 = vmatpush1.bf16.msra.mxu0 %v2885_v30  ;;  %1963 = vmatpush3.bf16.msra.mxu1 %v2182_v58  ;;  %v1712_v58 = vpack.c.bf16 %v2946_v62, %v2826_v61 }
 0x628   :  { %1288 = vmatprep.subr.bf16.mxu0 %v2892_v38  ;;  %1964 = vmatprep.subr.bf16.mxu1 %v3159_v57 }
 0x62b   :  { %1289 = vmatpush1.bf16.msra.mxu0 %v2899_v53  ;;  %1965 = vmatpush3.bf16.msra.mxu1 %v2183_v60 }
 0x62c   :  { %1290 = vmatprep.subr.bf16.mxu0 %v2906_v39  ;;  %1966 = vmatprep.subr.bf16.mxu1 %v3159_v57 }
 0x62f   :  { %1291 = vmatpush1.bf16.msra.mxu0 %v2913_v6  ;;  %1967 = vmatpush3.bf16.msra.mxu1 %v2184_v59 }
 0x630   :  { %1292 = vmatprep.subr.bf16.mxu0 %v2920_v40  ;;  %1968 = vmatprep.subr.bf16.mxu1 %v3159_v57 }
 0x633   :  { %1293 = vmatpush1.bf16.msra.mxu0 %v2927_v7  ;;  %1969 = vmatpush3.bf16.msra.mxu1 %v2185_v26 }
 0x634   :  { %1294 = vmatprep.subr.bf16.mxu0 %v2186_v47  ;;  %1970 = vmatprep.subr.bf16.mxu1 %v3159_v57 }
 0x637   :  { %1295 = vmatpush1.bf16.msra.mxu0 %v2187_v13  ;;  %1971 = vmatpush3.bf16.msra.mxu1 %v2188_v33 }
 0x638   :  { %1976 = vmatprep.subr.bf16.mxu0 %v2045_v36 }
 0x6da   :  { %v1197_v37 = vpop.f32.mrf.mxu0  ;;  %v1238_v30 = vpop.f32.mrf.mxu1 }
 0x6db   :  { %v1198_v38 = vadd.f32 %v1197_v37, %v2558_v44  ;;  %v1239_v28 = vadd.f32 %v1238_v30, %v2589_v54 }
 0x6dc   :  { %v1199_v57 = vpop.f32.mrf.mxu0  ;;  %v1954_v53 = vpop.f32.mrf.mxu1 }
 0x6dd   :  { %v1245_v39 = vadd.f32 %v1198_v38, %v2578_v56  ;;  %v1200_v41 = vadd.f32 %v1199_v57, %v2568_v63  ;;  %v1696_v53 = vld [vmem:[%s3142_s8] ss:$0 sm:$0xff] }
 0x6de   :  { %v1201_v6 = vpop.f32.mrf.mxu0  ;;  %v1241_v40 = vpop.f32.mrf.mxu1 }
 0x6df   :  { %v1692_v7 = vmul.f32 -1.442695, %v1245_v39  ;;  %v1253_v15 = vadd.f32 %v1200_v41, %v3162_v12 }
 0x6e0   :  { %v1202_v8 = vpop.f32.mrf.mxu0  ;;  %v1955_v9 = vpop.f32.mrf.mxu1 }
 0x6e1   :  { %2113 = vpow2.f32 %v1692_v7  ;;  %v1693_v42 = vmul.f32 -1.442695, %v1253_v15  ;;  %v3168_v15 = vld [vmem:[#allocation5_spill] sm:$0xff] }
 0x6e3   :  { %2115 = vpow2.f32 %v1693_v42 }
 0x6ee   :  { %v2114_v16 = vpop.eup %2113 }
 0x6ef   :  { %v1249_v25 = vadd.f32 1.0, %v2114_v16 }
 0x6f0   :  { %v2116_v17 = vpop.eup %2115 }
 0x6f1   :  { %2117 = vrcp.f32 %v1249_v25  ;;  %v1257_v18 = vadd.f32 1.0, %v2116_v17 }
 0x6f3   :  { %2119 = vrcp.f32 %v1257_v18 }
 0x6fe   :  { %v2118_v56 = vpop.eup %2117 }
 0x6ff   :  { %v1261_v19 = vmul.f32 %v2118_v56, %v1239_v28  ;;  %v1391_v56 = vpop.permute.xlu1 %1390 }
 0x700   :  { %v2120_v20 = vpop.eup %2119  ;;  %vm1392_vm4 = vcmp.eq.s32.totalorder %v1391_v56, 1 }
 0x701   :  { %v1262_v5 = vadd.f32 %v1261_v19, %v3163_v43  ;;  %v1264_v22 = vsub.f32 1.0, %v2120_v20  ;;  %v1266_v3 = vmul.f32 %v2120_v20, %v2953_v27  ;;  %vm1714_vm5 = vmpackc.low %vm1392_vm4, %vm1275_vm0 }
 0x703   :  { %2121 = vtanh.f32 %v1262_v5 }
 0x710   :  { %v2122_v31 = vpop.eup %2121 }
 0x711   :  { %v1265_v48 = vmul.f32 %v2122_v31, %v1264_v22 }
 0x713   :  { %v3022_v24 = vadd.f32 %v1266_v3, %v1265_v48 }
 0x715   :  { %v3029_v46 = vsel %vm1275_vm0, %v3022_v24, %v2953_v27  ;;  %v2047_v27 = vld [vmem:[%s3141_s7 + $0x28] sm:$0xff]  }
 0x716   :  { %v1279_v4 = vpack.c.bf16 %v3029_v46, %v3029_v46 }
 0x718   :  { %1313 = vmatmul.mubr.bf16.vlgmr.msra.gmra.mxu0 %v1279_v4  ;;  %1973 = vmatmul.mubr.bf16.vlgmr.msra.gmra.mxu1 %v1279_v4 }
 0x719   :  { %1977 = vmatpush3.bf16.msra.mxu0 %v2045_v36  ;;  %1992 = vmatprep.mubr.msk.bf16.mxu0 %vm1705_vm1, %v1706_v51  ;;  %v192_v36 = vadd.f32 %v3167_v14, %v2541_v23 }
 0x71a   :  { %1978 = vmatprep.subr.bf16.mxu0 %v2046_v10 }
 0x71d   :  { %1979 = vmatpush3.bf16.msra.mxu0 %v2046_v10 }
 0x71e   :  { %1980 = vmatprep.subr.bf16.mxu0 %v2047_v27 }
 0x721   :  { %1981 = vmatpush3.bf16.msra.mxu0 %v2047_v27 }
 0x722   :  { %1982 = vmatprep.subr.bf16.mxu0 %v2048_v29 }
 0x725   :  { %1983 = vmatpush3.bf16.msra.mxu0 %v2048_v29 }
 0x726   :  { %1984 = vmatprep.subr.bf16.mxu0 %v2049_v21 }
 0x729   :  { %1985 = vmatpush3.bf16.msra.mxu0 %v2049_v21 }
 0x72a   :  { %1986 = vmatprep.subr.bf16.mxu0 %v2050_v0 }
 0x72d   :  { %1987 = vmatpush3.bf16.msra.mxu0 %v2050_v0 }
 0x72e   :  { %1988 = vmatprep.subr.bf16.mxu0 %v2051_v34 }
 0x731   :  { %1989 = vmatpush3.bf16.msra.mxu0 %v2051_v34 }
 0x732   :  { %1990 = vmatprep.subr.bf16.mxu0 %v2052_v32 }
 0x735   :  { %1991 = vmatpush3.bf16.msra.mxu0 %v2052_v32 }
 0x738   :  { %1993 = vmatmul.mubr.msk.bf16.vlgmr.msra.gmra.mxu0 %vm1708_vm2, %v1709_v35 }
 0x739   :  { %1996 = vmatprep.mubr.msk.bf16.mxu0 %vm1711_vm3, %v1712_v58 }
 0x7d8   :  { %v1314_v60 = vpop.f32.mrf.mxu0  ;;  %v1355_v59 = vpop.f32.mrf.mxu1 }
 0x7d9   :  { %v1315_v26 = vadd.f32 %v1314_v60, %v2558_v44  ;;  %v1356_v7 = vadd.f32 %v1355_v59, %v2589_v54 }
 0x7da   :  { %v1316_v11 = vpop.f32.mrf.mxu0  ;;  %v1974_v2 = vpop.f32.mrf.mxu1 }
 0x7db   :  { %v1362_v47 = vadd.f32 %v1315_v26, %v3166_v52  ;;  %v1317_v61 = vadd.f32 %v1316_v11, %v2568_v63 }
 0x7dc   :  { %v1318_v45 = vpop.f32.mrf.mxu0  ;;  %v1358_v13 = vpop.f32.mrf.mxu1 }
 0x7dd   :  { %v1694_v33 = vmul.f32 -1.442695, %v1362_v47  ;;  %v1370_v37 = vadd.f32 %v1317_v61, %v192_v36 }
 0x7de   :  { %v1319_v62 = vpop.f32.mrf.mxu0  ;;  %v1975_v50 = vpop.f32.mrf.mxu1 }
 0x7df   :  { %2123 = vpow2.f32 %v1694_v33  ;;  %v1695_v30 = vmul.f32 -1.442695, %v1370_v37 }
 0x7e1   :  { %2125 = vpow2.f32 %v1695_v30 }
 0x7ec   :  { %v2124_v38 = vpop.eup %2123 }
 0x7ed   :  { %v1366_v44 = vadd.f32 1.0, %v2124_v38 }
 0x7ee   :  { %v2126_v57 = vpop.eup %2125 }
 0x7ef   :  { %2127 = vrcp.f32 %v1366_v44  ;;  %v1374_v6 = vadd.f32 1.0, %v2126_v57 }
 0x7f1   :  { %2129 = vrcp.f32 %v1374_v6 }
 0x7f8   :  { %v1994_v39 = vpop.f32.mrf.mxu0 }
 0x7f9   :  { %v1523_v63 = vadd.f32 %v1994_v39, %v1696_v53 }
 0x7fa   :  { %v1514_v40 = vpop.f32.mrf.mxu0 }
 0x7fb   :  { %1549 = vmax.xlane.f32.xlu0 %v1523_v63  ;;  %v1515_v9 = vadd.f32 %v1696_v53, %v1514_v40 }
 0x7fc   :  { %v2128_v23 = vpop.eup %2127  ;;  %v1995_v41 = vpop.f32.mrf.mxu0 }
 0x7fd   :  { %v1378_v8 = vmul.f32 %v2128_v23, %v1356_v7  ;;  %v1526_v25 = vadd.f32 %v1995_v41, %v1696_v53 }
 0x7fe   :  { %v1517_v12 = vpop.f32.mrf.mxu0  ;;  %v2130_v17 = vpop.eup %2129 }
 0x7ff   :  { %v1379_v42 = vadd.f32 %v1378_v8, %v3168_v15  ;;  %v1518_v16 = vadd.f32 %v1696_v53, %v1517_v12  ;;  %1545 = vmax.xlane.f32.xlu0 %v1515_v9  ;;  %v1381_v18 = vsub.f32 1.0, %v2130_v17  ;;  %v1383_v19 = vmul.f32 %v2130_v17, %v3029_v46 }
 0x801   :  { %2131 = vtanh.f32 %v1379_v42  ;;  %1547 = vmax.xlane.f32.xlu1 %v1518_v16 }
 0x803   :  { %1551 = vmax.xlane.f32.xlu0 %v1526_v25 }
 0x80e   :  { %v2132_v28 = vpop.eup %2131 }
 0x80f   :  { %v1382_v54 = vmul.f32 %v2132_v28, %v1381_v18 }
 0x811   :  { %v1384_v43 = vadd.f32 %v1383_v19, %v1382_v54 }
 0x813   :  { %v1393_v5 = vsel %vm1392_vm4, %v1384_v43, %v3029_v46  ;;  %v1715_v20 = vpack.c.bf16 %v1384_v43, %v3022_v24 }
 0x814   :  { %1396 = vst [vmem:[%s3143_s10] sm:$0xff] %v1393_v5 }
 0x815   :  { %1997 = vmatmul.mubr.msk.bf16.gmra.mxu0 %vm1714_vm5, %v1715_v20 }
 0x884   :  { %v1550_v22 = vpop.xlane.xlu0 %1549 }
 0x885   :  { %v3092_v4 = vsub.f32 %v1523_v63, %v1550_v22 }
 0x887   :  { %v1573_v55 = vmul.f32 1.442695, %v3092_v4 }
 0x888   :  { %v1546_v31 = vpop.xlane.xlu0 %1545 }
 0x889   :  { %v3090_v48 = vsub.f32 %v1515_v9, %v1546_v31 }
 0x88a   :  { %v1548_v3 = vpop.xlane.xlu1 %1547 }
 0x88b   :  { %v1569_v10 = vmul.f32 1.442695, %v3090_v48  ;;  %v3095_v46 = vsub.f32 %v1518_v16, %v1548_v3 }
 0x88c   :  { %v1552_v24 = vpop.xlane.xlu0 %1551 }
 0x88d   :  { %2133 = vpow2.f32 %v1569_v10  ;;  %v1571_v49 = vmul.f32 1.442695, %v3095_v46  ;;  %v3099_v51 = vsub.f32 %v1526_v25, %v1552_v24 }
 0x88e   :  { %2135 = vpow2.f32 %v1573_v55 }
 0x88f   :  { %2137 = vpow2.f32 %v1571_v49  ;;  %v1575_v29 = vmul.f32 1.442695, %v3099_v51 }
 0x891   :  { %2139 = vpow2.f32 %v1575_v29 }
 0x89a   :  { %v2134_v60 = vpop.eup %2133 }
 0x89b   :  { %v2136_v59 = vpop.eup %2135 }
 0x89c   :  { %v2138_v26 = vpop.eup %2137 }
 0x89e   :  { %v2140_v11 = vpop.eup %2139 }
 0x8d5   :  { %v1998_v1 = vpop.f32.mrf.mxu0 }
 0x8d6   :  { %v1539_v32 = vadd.f32 %v1998_v1, %v1696_v53 }
 0x8d7   :  { %v1530_v27 = vpop.f32.mrf.mxu0 }
 0x8d8   :  { %v1531_v21 = vadd.f32 %v1696_v53, %v1530_v27 }
 0x8d9   :  { %v1999_v0 = vpop.f32.mrf.mxu0 }
 0x8da   :  { %1553 = vmax.xlane.f32.xlu1 %v1531_v21  ;;  %v1542_v58 = vadd.f32 %v1999_v0, %v1696_v53 }
 0x8db   :  { %v1533_v34 = vpop.f32.mrf.mxu0 }
 0x8dc   :  { %v1534_v35 = vadd.f32 %v1696_v53, %v1533_v34 }
 0x8de   :  { %1555 = vmax.xlane.f32.xlu0 %v1534_v35  ;;  %1557 = vmax.xlane.f32.xlu1 %v1539_v32 }
 0x8e2   :  { %1559 = vmax.xlane.f32.xlu0 %v1542_v58  ;;  %1585 = vadd.xlane.f32.xlu1 %v2134_v60 }
 0x8e6   :  { %1587 = vadd.xlane.f32.xlu0 %v2138_v26  ;;  %1589 = vadd.xlane.f32.xlu1 %v2136_v59 }
 0x8ea   :  { %1591 = vadd.xlane.f32.xlu0 %v2140_v11 }
 0x963   :  { %v1554_v2 = vpop.xlane.xlu1 %1553 }
 0x964   :  { %v1565_v52 = vsub.f32 %v1531_v21, %v1554_v2 }
 0x966   :  { %v1577_v47 = vmul.f32 1.442695, %v1565_v52 }
 0x967   :  { %v1556_v45 = vpop.xlane.xlu0 %1555  ;;  %v1558_v13 = vpop.xlane.xlu1 %1557 }
 0x968   :  { %2141 = vpow2.f32 %v1577_v47  ;;  %v1566_v33 = vsub.f32 %v1534_v35, %v1556_v45  ;;  %v3102_v61 = vsub.f32 %v1539_v32, %v1558_v13 }
 0x96a   :  { %v1579_v62 = vmul.f32 1.442695, %v1566_v33  ;;  %v1581_v50 = vmul.f32 1.442695, %v3102_v61 }
 0x96b   :  { %v1560_v14 = vpop.xlane.xlu0 %1559  ;;  %v1586_v36 = vpop.xlane.xlu1 %1585 }
 0x96c   :  { %2143 = vpow2.f32 %v1579_v62  ;;  %v1568_v37 = vsub.f32 %v1542_v58, %v1560_v14 }
 0x96d   :  { %2145 = vpow2.f32 %v1581_v50 }
 0x96e   :  { %v1583_v30 = vmul.f32 1.442695, %v1568_v37  ;;  %2147 = vlog2.f32 %v1586_v36 }
 0x96f   :  { %v1588_v38 = vpop.xlane.xlu0 %1587  ;;  %v1590_v44 = vpop.xlane.xlu1 %1589 }
 0x970   :  { %2149 = vpow2.f32 %v1583_v30 }
 0x971   :  { %2151 = vlog2.f32 %v1588_v38 }
 0x972   :  { %2153 = vlog2.f32 %v1590_v44 }
 0x973   :  { %v1592_v57 = vpop.xlane.xlu0 %1591 }
 0x974   :  { %2155 = vlog2.f32 %v1592_v57 }
 0x975   :  { %v2142_v53 = vpop.eup %2141 }
 0x976   :  { %1593 = vadd.xlane.f32.xlu1 %v2142_v53 }
 0x979   :  { %v2144_v39 = vpop.eup %2143 }
 0x97a   :  { %v2146_v6 = vpop.eup %2145  ;;  %1595 = vadd.xlane.f32.xlu0 %v2144_v39 }
 0x97b   :  { %v2148_v63 = vpop.eup %2147  ;;  %1597 = vadd.xlane.f32.xlu1 %v2146_v6 }
 0x97c   :  { %v1602_v40 = vmul.f32 0.6931472, %v2148_v63 }
 0x97d   :  { %v2150_v7 = vpop.eup %2149 }
 0x97e   :  { %v2152_v23 = vpop.eup %2151  ;;  %v1617_v41 = vsub.f32 %v3090_v48, %v1602_v40  ;;  %1599 = vadd.xlane.f32.xlu0 %v2150_v7 }
 0x97f   :  { %v2154_v8 = vpop.eup %2153  ;;  %v1604_v9 = vmul.f32 0.6931472, %v2152_v23 }
 0x980   :  { %1625 = vst [vmem:[%s3144_s9] sm:$0xff] %v1617_v41  ;;  %v1606_v12 = vmul.f32 0.6931472, %v2154_v8 }
 0x981   :  { %v2156_v15 = vpop.eup %2155  ;;  %v1618_v42 = vsub.f32 %v3095_v46, %v1604_v9 }
 0x982   :  { %v1619_v16 = vsub.f32 %v3092_v4, %v1606_v12  ;;  %v1608_v25 = vmul.f32 0.6931472, %v2156_v15 }
 0x983   :  { %1626 = vst [vmem:[%s3144_s9 + $0x8] sm:$0xff] %v1618_v42 }
 0x984   :  { %1627 = vst [vmem:[%s3144_s9 + $0x10] sm:$0xff] %v1619_v16  ;;  %v1620_v17 = vsub.f32 %v3099_v51, %v1608_v25 }
 0x986   :  { %1628 = vst [vmem:[%s3144_s9 + $0x18] sm:$0xff] %v1620_v17 }
 0x9ff   :  { %v1594_v18 = vpop.xlane.xlu1 %1593 }
 0xa00   :  { %2157 = vlog2.f32 %v1594_v18 }
 0xa03   :  { %v1596_v28 = vpop.xlane.xlu0 %1595 }
 0xa04   :  { %2159 = vlog2.f32 %v1596_v28  ;;  %v1598_v56 = vpop.xlane.xlu1 %1597 }
 0xa05   :  { %2161 = vlog2.f32 %v1598_v56 }
 0xa07   :  { %v1600_v54 = vpop.xlane.xlu0 %1599 }
 0xa08   :  { %2163 = vlog2.f32 %v1600_v54 }
 0xa0d   :  { %v2158_v19 = vpop.eup %2157 }
 0xa0e   :  { %v1610_v43 = vmul.f32 0.6931472, %v2158_v19 }
 0xa10   :  { %v1621_v5 = vsub.f32 %v1565_v52, %v1610_v43 }
 0xa11   :  { %v2160_v20 = vpop.eup %2159 }
 0xa12   :  { %v2162_v22 = vpop.eup %2161  ;;  %1629 = vst [vmem:[%s3144_s9 + $0x20] sm:$0xff] %v1621_v5  ;;  %v1612_v31 = vmul.f32 0.6931472, %v2160_v20 }
 0xa13   :  { %v1614_v48 = vmul.f32 0.6931472, %v2162_v22 }
 0xa14   :  { %v1622_v3 = vsub.f32 %v1566_v33, %v1612_v31 }
 0xa15   :  { %v2164_v4 = vpop.eup %2163  ;;  %v1623_v10 = vsub.f32 %v3102_v61, %v1614_v48 }
 0xa16   :  { %1630 = vst [vmem:[%s3144_s9 + $0x28] sm:$0xff] %v1622_v3  ;;  %v1616_v46 = vmul.f32 0.6931472, %v2164_v4 }
 0xa17   :  { %1631 = vst [vmem:[%s3144_s9 + $0x30] sm:$0xff] %v1623_v10 }
 0xa18   :  { %v1624_v24 = vsub.f32 %v1568_v37, %v1616_v46 }
 0xa1a   :  { %1632 = vst [vmem:[%s3144_s9 + $0x38] sm:$0xff] %v1624_v24 }

</bundles_post_ra>
